<compile_context>
chip_gen: v7x
topology: tpu7x:2x2x1
jax: 0.10.0
libtpu: 0.0.40
codegen_flags: <defaults>
</compile_context>

<pallas_src>
import functools
import math

import jax
import jax.numpy as jnp
from jax import lax
from jax.experimental import pallas as pl
from jax.experimental.pallas import tpu as pltpu


# ---------------------------------------------------------------------------
# Pallas kernel: post-norm transformer-encoder stack, emits last-token hidden
# ---------------------------------------------------------------------------
def encoder_kernel(x_ref, wqkv_ref, bqkv_ref, wo_ref, bo_ref,
                   ln1w_ref, ln1b_ref, w1_ref, b1_ref, w2_ref, b2_ref,
                   ln2w_ref, ln2b_ref, o_ref, *, num_heads, eps):
    Bt, S, D = x_ref.shape               # batch-block, seq, d_model
    L = wqkv_ref.shape[0]
    H = num_heads
    Dh = D // H
    N = Bt * S
    scale = 1.0 / math.sqrt(Dh)
    cdt = wqkv_ref.dtype                 # MXU input dtype (bf16 or f32)
    f32 = jnp.float32

    def mm(a, w):                        # 2-D MXU matmul, f32 accumulation
        return jnp.dot(a.astype(cdt), w, preferred_element_type=f32)

    def bdot(a, b, dims):                # rank-3 batched dot, f32 accumulation
        return lax.dot_general(a.astype(cdt), b.astype(cdt), dims,
                               preferred_element_type=f32)

    def layer_norm(z, w, b):
        # single-pass mean / E[x^2]; rsqrt on EUP; fused scale+shift
        mu = jnp.mean(z, axis=-1, keepdims=True)
        ms = jnp.mean(z * z, axis=-1, keepdims=True)
        inv = lax.rsqrt(ms - mu * mu + eps)
        return (z - mu) * (inv * w.astype(f32)) + b.astype(f32)

    h = x_ref[...].astype(f32).reshape(N, D)          # residual stream in f32

    def layer(l, h):
        bqkv = bqkv_ref[l].astype(f32)
        bo = bo_ref[l].astype(f32)
        b1 = b1_ref[l].astype(f32)
        b2 = b2_ref[l].astype(f32)

        # ---- fused QKV projection: one lane-wide matmul --------------------
        qkv = mm(h, wqkv_ref[l]) + bqkv                          # (N, 3D)

        # ---- regroup heads to (H*Bt, S, Dh): lane slices + major concat ----
        def heads_of(col0):
            parts = [qkv[:, col0 + i * Dh: col0 + (i + 1) * Dh]
                     .reshape(Bt, S, Dh) for i in range(H)]
            return jnp.concatenate(parts, axis=0)                # (H*Bt, S, Dh)

        qg = heads_of(0)
        kg = heads_of(D)
        vg = heads_of(2 * D)

        # ---- all heads in two batched dot_generals -------------------------
        s = bdot(qg, kg, (((2,), (2,)), ((0,), (0,)))) * scale   # (H*Bt, S, S)
        s = s - jnp.max(s, axis=-1, keepdims=True)
        p = jnp.exp(s)
        p = p * pl.reciprocal(jnp.sum(p, axis=-1, keepdims=True), approx=True)
        ag = bdot(p, vg, (((2,), (1,)), ((0,), (0,))))           # (H*Bt, S, Dh)

        # ---- output projection without a lane concat:
        #      concat(heads) @ Wo == sum_h head_h @ Wo[h]  (Wo pre-split) -----
        ah = ag.reshape(H, N, Dh)
        o3 = bdot(ah, wo_ref[l], (((2,), (1,)), ((0,), (0,))))   # (H, N, D)
        attn = jnp.sum(o3, axis=0) + bo                          # (N, D)

        h1 = layer_norm(h + attn, ln1w_ref[l], ln1b_ref[l])      # post-norm

        # ---- feed-forward (relu) --------------------------------------------
        f = jnp.maximum(mm(h1, w1_ref[l]) + b1, 0.0)
        f = mm(f, w2_ref[l]) + b2
        return layer_norm(h1 + f, ln2w_ref[l], ln2b_ref[l])

    h = lax.fori_loop(0, L, layer, h, unroll=True)

    # last-token hidden state per batch row; lane-dense fc stays in XLA
    o_ref[0] = h.reshape(Bt, S, D)[:, S - 1, :]


# ---------------------------------------------------------------------------
# Wrapper: embedding + positional encoding (XLA), pallas_call, final fc (XLA)
# ---------------------------------------------------------------------------
def transformer_forward(tokens, params, pe, num_heads, *,
                        compute_dtype=jnp.bfloat16, batch_block=None):
    B, S = tokens.shape
    D = params["emb"].shape[1]
    H = num_heads
    Dh = D // H
    L = params["wqkv"].shape[0]

    # XLA glue: embedding gather + positional encoding, cast to compute dtype
    x = (params["emb"][tokens] + pe[:S][None, :, :]).astype(compute_dtype)

    # pre-split out-projection per head: (L, D, D) -> (L, H, Dh, D)
    wo3 = params["wo"].reshape(L, H, Dh, D)

    cast = lambda a: a.astype(compute_dtype)
    f32c = lambda a: a.astype(jnp.float32)
    weights = [cast(params["wqkv"]), f32c(params["bqkv"]),
               cast(wo3),            f32c(params["bo"]),
               f32c(params["ln1w"]), f32c(params["ln1b"]),
               cast(params["w1"]),   f32c(params["b1"]),
               cast(params["w2"]),   f32c(params["b2"]),
               f32c(params["ln2w"]), f32c(params["ln2b"])]

    # batch blocking: 2 steps when possible (v7x megacore), else one big step
    if batch_block is None:
        batch_block = B // 2 if (B % 2 == 0 and B >= 2) else B
    bt = batch_block
    assert B % bt == 0
    nb = B // bt

    def const_spec(w):
        nd = w.ndim
        return pl.BlockSpec(w.shape, lambda i: (0,) * nd)

    in_specs = [pl.BlockSpec((bt, S, D), lambda i: (i, 0, 0))]
    in_specs += [const_spec(w) for w in weights]

    # explicit VMEM budget: double-buffered inputs + output + headroom
    nbytes = lambda a: a.size * a.dtype.itemsize
    est = 2 * (nbytes(x) // nb + sum(nbytes(w) for w in weights)) \
        + 4 * nb * bt * D + (8 << 20)
    vmem_limit = int(min(max(est, 16 << 20), 48 << 20))

    hidden = pl.pallas_call(
        functools.partial(encoder_kernel, num_heads=H, eps=1e-5),
        out_shape=jax.ShapeDtypeStruct((nb, bt, D), jnp.float32),
        grid=(nb,),
        in_specs=in_specs,
        out_specs=pl.BlockSpec((1, bt, D), lambda i: (i, 0, 0)),
        compiler_params=pltpu.CompilerParams(
            dimension_semantics=("parallel",),
            vmem_limit_bytes=vmem_limit),
    )(x, *weights)

    last = hidden.reshape(B, D)                       # (B, D) f32
    # lane-dense final projection in plain XLA (fc(x[-1]))
    return last @ params["wfc"] + params["bfc"]       # (B, V)


# ---------------------------------------------------------------------------
# Deterministic synthetic parameters (weights stored pre-transposed: x @ W)
# ---------------------------------------------------------------------------
def init_params(key, V, D, H, L, F):
    ks = jax.random.split(key, 11)
    s = 0.02
    n = lambda k, shp: jax.random.normal(k, shp, jnp.float32) * s
    return dict(
        emb=n(ks[0], (V, D)),
        wqkv=n(ks[1], (L, D, 3 * D)), bqkv=n(ks[2], (L, 1, 3 * D)),
        wo=n(ks[3], (L, D, D)),       bo=n(ks[4], (L, 1, D)),
        ln1w=jnp.ones((L, 1, D), jnp.float32), ln1b=jnp.zeros((L, 1, D), jnp.float32),
        w1=n(ks[5], (L, D, F)),       b1=n(ks[6], (L, 1, F)),
        w2=n(ks[7], (L, F, D)),       b2=n(ks[8], (L, 1, D)),
        ln2w=jnp.ones((L, 1, D), jnp.float32), ln2b=jnp.zeros((L, 1, D), jnp.float32),
        wfc=n(ks[9], (D, V)),         bfc=n(ks[10], (1, V)),
    )


def positional_encoding(max_len, d):
    pos = jnp.arange(max_len, dtype=jnp.float32)[:, None]
    div = jnp.exp(jnp.arange(0, d, 2, dtype=jnp.float32) * -(math.log(10000.0) / d))
    pe = jnp.zeros((max_len, d), jnp.float32)
    pe = pe.at[:, 0::2].set(jnp.sin(pos * div))
    pe = pe.at[:, 1::2].set(jnp.cos(pos * div))
    return pe


# ---------------------------------------------------------------------------
# Pure-JAX f32 reference of the same forward pass (verification)
# ---------------------------------------------------------------------------
def reference_forward(tokens, params, pe, num_heads):
    B, S = tokens.shape
    D = params["emb"].shape[1]
    H, Dh = num_heads, D // num_heads
    L = params["wqkv"].shape[0]

    def ln(z, w, b):
        mu = z.mean(-1, keepdims=True)
        var = ((z - mu) ** 2).mean(-1, keepdims=True)
        return (z - mu) * lax.rsqrt(var + 1e-5) * w + b

    x = params["emb"][tokens] + pe[:S][None]
    for l in range(L):
        qkv = x @ params["wqkv"][l] + params["bqkv"][l]
        q = qkv[..., :D].reshape(B, S, H, Dh)
        k = qkv[..., D:2 * D].reshape(B, S, H, Dh)
        v = qkv[..., 2 * D:].reshape(B, S, H, Dh)
        s = jnp.einsum("bshd,bthd->bhst", q, k) / math.sqrt(Dh)
        p = jax.nn.softmax(s, axis=-1)
        a = jnp.einsum("bhst,bthd->bshd", p, v).reshape(B, S, D)
        a = a @ params["wo"][l] + params["bo"][l]
        x = ln(x + a, params["ln1w"][l], params["ln1b"][l])
        f = jax.nn.relu(x @ params["w1"][l] + params["b1"][l])
        f = f @ params["w2"][l] + params["b2"][l]
        x = ln(x + f, params["ln2w"][l], params["ln2b"][l])
    return x[:, -1, :] @ params["wfc"] + params["bfc"]


if __name__ == "__main__":
    # module hyper-params: vocab_size, embedding_dim, num_heads, num_layers,
    #                      dim_feedforward, max_len
    V, D, H, L, F, MAX_LEN = 64, 32, 4, 2, 64, 16
    B, S = 2, 8

    key = jax.random.PRNGKey(0)
    kp, kt = jax.random.split(key)
    params = init_params(kp, V, D, H, L, F)
    pe = positional_encoding(MAX_LEN, D)
    tokens = jax.random.randint(kt, (B, S), 0, V, dtype=jnp.int32)

    ref = reference_forward(tokens, params, pe, H)

    # f32 compute path: tight numerical check of the kernel math
    out_f32 = jax.block_until_ready(
        transformer_forward(tokens, params, pe, H, compute_dtype=jnp.float32))
    assert out_f32.shape == (B, V), out_f32.shape
    err_f32 = float(jnp.max(jnp.abs(out_f32 - ref)))
    assert err_f32 < 5e-3, f"f32 max abs error vs reference: {err_f32}"

    # bf16 compute path (default performance configuration)
    out_bf16 = jax.block_until_ready(transformer_forward(tokens, params, pe, H))
    assert out_bf16.shape == (B, V), out_bf16.shape
    err_bf16 = float(jnp.max(jnp.abs(out_bf16 - ref)))
    assert err_bf16 < 5e-2, f"bf16 max abs error vs reference: {err_bf16}"

    print("KERNEL_OK")
</pallas_src>

<mosaic_0001>
module attributes {stable_mosaic.version = 11 : i64} {
  func.func @encoder_kernel(%arg0: i32, %arg1: memref<1x8x32xf32, #tpu.memory_space<vmem>>, %arg2: memref<2x32x96xf32, #tpu.memory_space<vmem>>, %arg3: memref<2x1x96xf32, #tpu.memory_space<vmem>>, %arg4: memref<2x4x8x32xf32, #tpu.memory_space<vmem>>, %arg5: memref<2x1x32xf32, #tpu.memory_space<vmem>>, %arg6: memref<2x1x32xf32, #tpu.memory_space<vmem>>, %arg7: memref<2x1x32xf32, #tpu.memory_space<vmem>>, %arg8: memref<2x32x64xf32, #tpu.memory_space<vmem>>, %arg9: memref<2x1x64xf32, #tpu.memory_space<vmem>>, %arg10: memref<2x64x32xf32, #tpu.memory_space<vmem>>, %arg11: memref<2x1x32xf32, #tpu.memory_space<vmem>>, %arg12: memref<2x1x32xf32, #tpu.memory_space<vmem>>, %arg13: memref<2x1x32xf32, #tpu.memory_space<vmem>>, %arg14: memref<1x1x32xf32, #tpu.memory_space<vmem>>) attributes {dimension_semantics = [#tpu.dimension_semantics<parallel>], iteration_bounds = array<i64: 2>, scalar_prefetch = 0 : i64, scratch_operands = 0 : i64, tpu.core_type = #tpu.core_type<tc>, window_params = [{transform_indices = @transform_0, window_bounds = array<i64: 1, 8, 32>}, {pipeline_mode = #tpu.pipeline_mode<synchronous>, transform_indices = @transform_1, window_bounds = array<i64: 2, 32, 96>}, {pipeline_mode = #tpu.pipeline_mode<synchronous>, transform_indices = @transform_2, window_bounds = array<i64: 2, 1, 96>}, {pipeline_mode = #tpu.pipeline_mode<synchronous>, transform_indices = @transform_3, window_bounds = array<i64: 2, 4, 8, 32>}, {pipeline_mode = #tpu.pipeline_mode<synchronous>, transform_indices = @transform_4, window_bounds = array<i64: 2, 1, 32>}, {pipeline_mode = #tpu.pipeline_mode<synchronous>, transform_indices = @transform_5, window_bounds = array<i64: 2, 1, 32>}, {pipeline_mode = #tpu.pipeline_mode<synchronous>, transform_indices = @transform_6, window_bounds = array<i64: 2, 1, 32>}, {pipeline_mode = #tpu.pipeline_mode<synchronous>, transform_indices = @transform_7, window_bounds = array<i64: 2, 32, 64>}, {pipeline_mode = #tpu.pipeline_mode<synchronous>, transform_indices = @transform_8, window_bounds = array<i64: 2, 1, 64>}, {pipeline_mode = #tpu.pipeline_mode<synchronous>, transform_indices = @transform_9, window_bounds = array<i64: 2, 64, 32>}, {pipeline_mode = #tpu.pipeline_mode<synchronous>, transform_indices = @transform_10, window_bounds = array<i64: 2, 1, 32>}, {pipeline_mode = #tpu.pipeline_mode<synchronous>, transform_indices = @transform_11, window_bounds = array<i64: 2, 1, 32>}, {pipeline_mode = #tpu.pipeline_mode<synchronous>, transform_indices = @transform_12, window_bounds = array<i64: 2, 1, 32>}, {transform_indices = @transform_13, window_bounds = array<i64: 1, 1, 32>}]} {
    %c0 = arith.constant 0 : index
    %c0_0 = arith.constant 0 : index
    %c0_1 = arith.constant 0 : index
    %0 = vector.load %arg1[%c0, %c0_0, %c0_1] : memref<1x8x32xf32, #tpu.memory_space<vmem>>, vector<1x8x32xf32>
    %1 = vector.shape_cast %0 : vector<1x8x32xf32> to vector<8x32xf32>
    %c0_i32 = arith.constant 0 : i32
    %2 = arith.index_cast %c0_i32 : i32 to index
    %c0_2 = arith.constant 0 : index
    %c0_3 = arith.constant 0 : index
    %3 = vector.load %arg3[%2, %c0_2, %c0_3] : memref<2x1x96xf32, #tpu.memory_space<vmem>>, vector<1x1x96xf32>
    %4 = vector.shape_cast %3 : vector<1x1x96xf32> to vector<1x96xf32>
    %5 = arith.index_cast %c0_i32 : i32 to index
    %c0_4 = arith.constant 0 : index
    %c0_5 = arith.constant 0 : index
    %6 = vector.load %arg5[%5, %c0_4, %c0_5] : memref<2x1x32xf32, #tpu.memory_space<vmem>>, vector<1x1x32xf32>
    %7 = vector.shape_cast %6 : vector<1x1x32xf32> to vector<1x32xf32>
    %8 = arith.index_cast %c0_i32 : i32 to index
    %c0_6 = arith.constant 0 : index
    %c0_7 = arith.constant 0 : index
    %9 = vector.load %arg9[%8, %c0_6, %c0_7] : memref<2x1x64xf32, #tpu.memory_space<vmem>>, vector<1x1x64xf32>
    %10 = vector.shape_cast %9 : vector<1x1x64xf32> to vector<1x64xf32>
    %11 = arith.index_cast %c0_i32 : i32 to index
    %c0_8 = arith.constant 0 : index
    %c0_9 = arith.constant 0 : index
    %12 = vector.load %arg11[%11, %c0_8, %c0_9] : memref<2x1x32xf32, #tpu.memory_space<vmem>>, vector<1x1x32xf32>
    %13 = vector.shape_cast %12 : vector<1x1x32xf32> to vector<1x32xf32>
    %14 = arith.index_cast %c0_i32 : i32 to index
    %c0_10 = arith.constant 0 : index
    %c0_11 = arith.constant 0 : index
    %15 = vector.load %arg2[%14, %c0_10, %c0_11] : memref<2x32x96xf32, #tpu.memory_space<vmem>>, vector<1x32x96xf32>
    %16 = vector.shape_cast %15 : vector<1x32x96xf32> to vector<32x96xf32>
    %cst = arith.constant dense<0.000000e+00> : vector<8x96xf32>
    %17 = tpu.matmul %1, %16, %cst {dimension_numbers = #tpu.dot_dimension_numbers<[1], [0], [0], [1], [0, 0, 1, 1], [], []>} : vector<8x32xf32>, vector<32x96xf32>, vector<8x96xf32> -> vector<8x96xf32>
    %18 = vector.broadcast %4 : vector<1x96xf32> to vector<8x96xf32>
    %19 = arith.addf %17, %18 : vector<8x96xf32>
    %20 = vector.extract_strided_slice %19 {offsets = [0, 0], sizes = [8, 8], strides = [1, 1]} : vector<8x96xf32> to vector<8x8xf32>
    %21 = vector.shape_cast %20 : vector<8x8xf32> to vector<1x8x8xf32>
    %22 = vector.extract_strided_slice %19 {offsets = [0, 8], sizes = [8, 8], strides = [1, 1]} : vector<8x96xf32> to vector<8x8xf32>
    %23 = vector.shape_cast %22 : vector<8x8xf32> to vector<1x8x8xf32>
    %24 = vector.extract_strided_slice %19 {offsets = [0, 16], sizes = [8, 8], strides = [1, 1]} : vector<8x96xf32> to vector<8x8xf32>
    %25 = vector.shape_cast %24 : vector<8x8xf32> to vector<1x8x8xf32>
    %26 = vector.extract_strided_slice %19 {offsets = [0, 24], sizes = [8, 8], strides = [1, 1]} : vector<8x96xf32> to vector<8x8xf32>
    %27 = vector.shape_cast %26 : vector<8x8xf32> to vector<1x8x8xf32>
    %28 = tpu.concatenate %21, %23, %25, %27 in 0 : vector<1x8x8xf32>, vector<1x8x8xf32>, vector<1x8x8xf32>, vector<1x8x8xf32> -> vector<4x8x8xf32>
    %29 = vector.extract_strided_slice %19 {offsets = [0, 32], sizes = [8, 8], strides = [1, 1]} : vector<8x96xf32> to vector<8x8xf32>
    %30 = vector.shape_cast %29 : vector<8x8xf32> to vector<1x8x8xf32>
    %31 = vector.extract_strided_slice %19 {offsets = [0, 40], sizes = [8, 8], strides = [1, 1]} : vector<8x96xf32> to vector<8x8xf32>
    %32 = vector.shape_cast %31 : vector<8x8xf32> to vector<1x8x8xf32>
    %33 = vector.extract_strided_slice %19 {offsets = [0, 48], sizes = [8, 8], strides = [1, 1]} : vector<8x96xf32> to vector<8x8xf32>
    %34 = vector.shape_cast %33 : vector<8x8xf32> to vector<1x8x8xf32>
    %35 = vector.extract_strided_slice %19 {offsets = [0, 56], sizes = [8, 8], strides = [1, 1]} : vector<8x96xf32> to vector<8x8xf32>
    %36 = vector.shape_cast %35 : vector<8x8xf32> to vector<1x8x8xf32>
    %37 = tpu.concatenate %30, %32, %34, %36 in 0 : vector<1x8x8xf32>, vector<1x8x8xf32>, vector<1x8x8xf32>, vector<1x8x8xf32> -> vector<4x8x8xf32>
    %38 = vector.extract_strided_slice %19 {offsets = [0, 64], sizes = [8, 8], strides = [1, 1]} : vector<8x96xf32> to vector<8x8xf32>
    %39 = vector.shape_cast %38 : vector<8x8xf32> to vector<1x8x8xf32>
    %40 = vector.extract_strided_slice %19 {offsets = [0, 72], sizes = [8, 8], strides = [1, 1]} : vector<8x96xf32> to vector<8x8xf32>
    %41 = vector.shape_cast %40 : vector<8x8xf32> to vector<1x8x8xf32>
    %42 = vector.extract_strided_slice %19 {offsets = [0, 80], sizes = [8, 8], strides = [1, 1]} : vector<8x96xf32> to vector<8x8xf32>
    %43 = vector.shape_cast %42 : vector<8x8xf32> to vector<1x8x8xf32>
    %44 = vector.extract_strided_slice %19 {offsets = [0, 88], sizes = [8, 8], strides = [1, 1]} : vector<8x96xf32> to vector<8x8xf32>
    %45 = vector.shape_cast %44 : vector<8x8xf32> to vector<1x8x8xf32>
    %46 = tpu.concatenate %39, %41, %43, %45 in 0 : vector<1x8x8xf32>, vector<1x8x8xf32>, vector<1x8x8xf32>, vector<1x8x8xf32> -> vector<4x8x8xf32>
    %cst_12 = arith.constant dense<0.000000e+00> : vector<4x8x8xf32>
    %47 = tpu.matmul %28, %37, %cst_12 {dimension_numbers = #tpu.dot_dimension_numbers<[2], [2], [1], [1], [0, 0, 0, 1, 1, 1], [0], [0]>} : vector<4x8x8xf32>, vector<4x8x8xf32>, vector<4x8x8xf32> -> vector<4x8x8xf32>
    %cst_13 = arith.constant 0.353553385 : f32
    %48 = vector.broadcast %cst_13 : f32 to vector<4x8x8xf32>
    %49 = arith.mulf %47, %48 : vector<4x8x8xf32>
    %cst_14 = arith.constant dense<0xFF800000> : vector<4x8xf32>
    %50 = vector.multi_reduction <maximumf>, %49, %cst_14 [2] : vector<4x8x8xf32> to vector<4x8xf32>
    %51 = vector.shape_cast %50 : vector<4x8xf32> to vector<4x8x1xf32>
    %52 = vector.broadcast %51 : vector<4x8x1xf32> to vector<4x8x8xf32>
    %53 = arith.subf %49, %52 : vector<4x8x8xf32>
    %54 = math.exp %53 : vector<4x8x8xf32>
    %cst_15 = arith.constant dense<0.000000e+00> : vector<4x8xf32>
    %55 = vector.multi_reduction <add>, %54, %cst_15 [2] : vector<4x8x8xf32> to vector<4x8xf32>
    %56 = vector.shape_cast %55 : vector<4x8xf32> to vector<4x8x1xf32>
    %57 = tpu.reciprocal %56 {approx = true} : vector<4x8x1xf32> -> vector<4x8x1xf32>
    %58 = vector.broadcast %57 : vector<4x8x1xf32> to vector<4x8x8xf32>
    %59 = arith.mulf %54, %58 : vector<4x8x8xf32>
    %cst_16 = arith.constant dense<0.000000e+00> : vector<4x8x8xf32>
    %60 = tpu.matmul %59, %46, %cst_16 {dimension_numbers = #tpu.dot_dimension_numbers<[2], [1], [1], [2], [0, 0, 0, 1, 1, 2], [0], [0]>} : vector<4x8x8xf32>, vector<4x8x8xf32>, vector<4x8x8xf32> -> vector<4x8x8xf32>
    %61 = arith.index_cast %c0_i32 : i32 to index
    %c0_17 = arith.constant 0 : index
    %c0_18 = arith.constant 0 : index
    %c0_19 = arith.constant 0 : index
    %62 = vector.load %arg4[%61, %c0_17, %c0_18, %c0_19] : memref<2x4x8x32xf32, #tpu.memory_space<vmem>>, vector<1x4x8x32xf32>
    %63 = vector.shape_cast %62 : vector<1x4x8x32xf32> to vector<4x8x32xf32>
    %cst_20 = arith.constant dense<0.000000e+00> : vector<4x8x32xf32>
    %64 = tpu.matmul %60, %63, %cst_20 {dimension_numbers = #tpu.dot_dimension_numbers<[2], [1], [1], [2], [0, 0, 0, 1, 1, 2], [0], [0]>} : vector<4x8x8xf32>, vector<4x8x32xf32>, vector<4x8x32xf32> -> vector<4x8x32xf32>
    %cst_21 = arith.constant dense<0.000000e+00> : vector<8x32xf32>
    %65 = vector.multi_reduction <add>, %64, %cst_21 [0] : vector<4x8x32xf32> to vector<8x32xf32>
    %66 = vector.broadcast %7 : vector<1x32xf32> to vector<8x32xf32>
    %67 = arith.addf %65, %66 : vector<8x32xf32>
    %68 = arith.addf %1, %67 : vector<8x32xf32>
    %69 = arith.index_cast %c0_i32 : i32 to index
    %c0_22 = arith.constant 0 : index
    %c0_23 = arith.constant 0 : index
    %70 = vector.load %arg6[%69, %c0_22, %c0_23] : memref<2x1x32xf32, #tpu.memory_space<vmem>>, vector<1x1x32xf32>
    %71 = vector.shape_cast %70 : vector<1x1x32xf32> to vector<1x32xf32>
    %72 = arith.index_cast %c0_i32 : i32 to index
    %c0_24 = arith.constant 0 : index
    %c0_25 = arith.constant 0 : index
    %73 = vector.load %arg7[%72, %c0_24, %c0_25] : memref<2x1x32xf32, #tpu.memory_space<vmem>>, vector<1x1x32xf32>
    %74 = vector.shape_cast %73 : vector<1x1x32xf32> to vector<1x32xf32>
    %cst_26 = arith.constant dense<0.000000e+00> : vector<8xf32>
    %75 = vector.multi_reduction <add>, %68, %cst_26 [1] : vector<8x32xf32> to vector<8xf32>
    %76 = vector.shape_cast %75 : vector<8xf32> to vector<8x1xf32>
    %cst_27 = arith.constant 3.200000e+01 : f32
    %77 = vector.broadcast %cst_27 : f32 to vector<8x1xf32>
    %78 = arith.divf %76, %77 : vector<8x1xf32>
    %79 = arith.mulf %68, %68 : vector<8x32xf32>
    %cst_28 = arith.constant dense<0.000000e+00> : vector<8xf32>
    %80 = vector.multi_reduction <add>, %79, %cst_28 [1] : vector<8x32xf32> to vector<8xf32>
    %81 = vector.shape_cast %80 : vector<8xf32> to vector<8x1xf32>
    %cst_29 = arith.constant 3.200000e+01 : f32
    %82 = vector.broadcast %cst_29 : f32 to vector<8x1xf32>
    %83 = arith.divf %81, %82 : vector<8x1xf32>
    %84 = arith.mulf %78, %78 : vector<8x1xf32>
    %85 = arith.subf %83, %84 : vector<8x1xf32>
    %cst_30 = arith.constant 9.99999974E-6 : f32
    %86 = vector.broadcast %cst_30 : f32 to vector<8x1xf32>
    %87 = arith.addf %85, %86 : vector<8x1xf32>
    %88 = math.rsqrt %87 : vector<8x1xf32>
    %89 = vector.broadcast %78 : vector<8x1xf32> to vector<8x32xf32>
    %90 = arith.subf %68, %89 : vector<8x32xf32>
    %91 = vector.broadcast %88 : vector<8x1xf32> to vector<8x32xf32>
    %92 = vector.broadcast %71 : vector<1x32xf32> to vector<8x32xf32>
    %93 = arith.mulf %91, %92 : vector<8x32xf32>
    %94 = arith.mulf %90, %93 : vector<8x32xf32>
    %95 = vector.broadcast %74 : vector<1x32xf32> to vector<8x32xf32>
    %96 = arith.addf %94, %95 : vector<8x32xf32>
    %97 = arith.index_cast %c0_i32 : i32 to index
    %c0_31 = arith.constant 0 : index
    %c0_32 = arith.constant 0 : index
    %98 = vector.load %arg8[%97, %c0_31, %c0_32] : memref<2x32x64xf32, #tpu.memory_space<vmem>>, vector<1x32x64xf32>
    %99 = vector.shape_cast %98 : vector<1x32x64xf32> to vector<32x64xf32>
    %cst_33 = arith.constant dense<0.000000e+00> : vector<8x64xf32>
    %100 = tpu.matmul %96, %99, %cst_33 {dimension_numbers = #tpu.dot_dimension_numbers<[1], [0], [0], [1], [0, 0, 1, 1], [], []>} : vector<8x32xf32>, vector<32x64xf32>, vector<8x64xf32> -> vector<8x64xf32>
    %101 = vector.broadcast %10 : vector<1x64xf32> to vector<8x64xf32>
    %102 = arith.addf %100, %101 : vector<8x64xf32>
    %cst_34 = arith.constant 0.000000e+00 : f32
    %103 = vector.broadcast %cst_34 : f32 to vector<8x64xf32>
    %104 = arith.maximumf %102, %103 : vector<8x64xf32>
    %105 = arith.index_cast %c0_i32 : i32 to index
    %c0_35 = arith.constant 0 : index
    %c0_36 = arith.constant 0 : index
    %106 = vector.load %arg10[%105, %c0_35, %c0_36] : memref<2x64x32xf32, #tpu.memory_space<vmem>>, vector<1x64x32xf32>
    %107 = vector.shape_cast %106 : vector<1x64x32xf32> to vector<64x32xf32>
    %cst_37 = arith.constant dense<0.000000e+00> : vector<8x32xf32>
    %108 = tpu.matmul %104, %107, %cst_37 {dimension_numbers = #tpu.dot_dimension_numbers<[1], [0], [0], [1], [0, 0, 1, 1], [], []>} : vector<8x64xf32>, vector<64x32xf32>, vector<8x32xf32> -> vector<8x32xf32>
    %109 = vector.broadcast %13 : vector<1x32xf32> to vector<8x32xf32>
    %110 = arith.addf %108, %109 : vector<8x32xf32>
    %111 = arith.addf %96, %110 : vector<8x32xf32>
    %112 = arith.index_cast %c0_i32 : i32 to index
    %c0_38 = arith.constant 0 : index
    %c0_39 = arith.constant 0 : index
    %113 = vector.load %arg12[%112, %c0_38, %c0_39] : memref<2x1x32xf32, #tpu.memory_space<vmem>>, vector<1x1x32xf32>
    %114 = vector.shape_cast %113 : vector<1x1x32xf32> to vector<1x32xf32>
    %115 = arith.index_cast %c0_i32 : i32 to index
    %c0_40 = arith.constant 0 : index
    %c0_41 = arith.constant 0 : index
    %116 = vector.load %arg13[%115, %c0_40, %c0_41] : memref<2x1x32xf32, #tpu.memory_space<vmem>>, vector<1x1x32xf32>
    %117 = vector.shape_cast %116 : vector<1x1x32xf32> to vector<1x32xf32>
    %cst_42 = arith.constant dense<0.000000e+00> : vector<8xf32>
    %118 = vector.multi_reduction <add>, %111, %cst_42 [1] : vector<8x32xf32> to vector<8xf32>
    %119 = vector.shape_cast %118 : vector<8xf32> to vector<8x1xf32>
    %cst_43 = arith.constant 3.200000e+01 : f32
    %120 = vector.broadcast %cst_43 : f32 to vector<8x1xf32>
    %121 = arith.divf %119, %120 : vector<8x1xf32>
    %122 = arith.mulf %111, %111 : vector<8x32xf32>
    %cst_44 = arith.constant dense<0.000000e+00> : vector<8xf32>
    %123 = vector.multi_reduction <add>, %122, %cst_44 [1] : vector<8x32xf32> to vector<8xf32>
    %124 = vector.shape_cast %123 : vector<8xf32> to vector<8x1xf32>
    %cst_45 = arith.constant 3.200000e+01 : f32
    %125 = vector.broadcast %cst_45 : f32 to vector<8x1xf32>
    %126 = arith.divf %124, %125 : vector<8x1xf32>
    %127 = arith.mulf %121, %121 : vector<8x1xf32>
    %128 = arith.subf %126, %127 : vector<8x1xf32>
    %cst_46 = arith.constant 9.99999974E-6 : f32
    %129 = vector.broadcast %cst_46 : f32 to vector<8x1xf32>
    %130 = arith.addf %128, %129 : vector<8x1xf32>
    %131 = math.rsqrt %130 : vector<8x1xf32>
    %132 = vector.broadcast %121 : vector<8x1xf32> to vector<8x32xf32>
    %133 = arith.subf %111, %132 : vector<8x32xf32>
    %134 = vector.broadcast %131 : vector<8x1xf32> to vector<8x32xf32>
    %135 = vector.broadcast %114 : vector<1x32xf32> to vector<8x32xf32>
    %136 = arith.mulf %134, %135 : vector<8x32xf32>
    %137 = arith.mulf %133, %136 : vector<8x32xf32>
    %138 = vector.broadcast %117 : vector<1x32xf32> to vector<8x32xf32>
    %139 = arith.addf %137, %138 : vector<8x32xf32>
    %c1_i32 = arith.constant 1 : i32
    %140 = arith.index_cast %c1_i32 : i32 to index
    %c0_47 = arith.constant 0 : index
    %c0_48 = arith.constant 0 : index
    %141 = vector.load %arg3[%140, %c0_47, %c0_48] : memref<2x1x96xf32, #tpu.memory_space<vmem>>, vector<1x1x96xf32>
    %142 = vector.shape_cast %141 : vector<1x1x96xf32> to vector<1x96xf32>
    %143 = arith.index_cast %c1_i32 : i32 to index
    %c0_49 = arith.constant 0 : index
    %c0_50 = arith.constant 0 : index
    %144 = vector.load %arg5[%143, %c0_49, %c0_50] : memref<2x1x32xf32, #tpu.memory_space<vmem>>, vector<1x1x32xf32>
    %145 = vector.shape_cast %144 : vector<1x1x32xf32> to vector<1x32xf32>
    %146 = arith.index_cast %c1_i32 : i32 to index
    %c0_51 = arith.constant 0 : index
    %c0_52 = arith.constant 0 : index
    %147 = vector.load %arg9[%146, %c0_51, %c0_52] : memref<2x1x64xf32, #tpu.memory_space<vmem>>, vector<1x1x64xf32>
    %148 = vector.shape_cast %147 : vector<1x1x64xf32> to vector<1x64xf32>
    %149 = arith.index_cast %c1_i32 : i32 to index
    %c0_53 = arith.constant 0 : index
    %c0_54 = arith.constant 0 : index
    %150 = vector.load %arg11[%149, %c0_53, %c0_54] : memref<2x1x32xf32, #tpu.memory_space<vmem>>, vector<1x1x32xf32>
    %151 = vector.shape_cast %150 : vector<1x1x32xf32> to vector<1x32xf32>
    %152 = arith.index_cast %c1_i32 : i32 to index
    %c0_55 = arith.constant 0 : index
    %c0_56 = arith.constant 0 : index
    %153 = vector.load %arg2[%152, %c0_55, %c0_56] : memref<2x32x96xf32, #tpu.memory_space<vmem>>, vector<1x32x96xf32>
    %154 = vector.shape_cast %153 : vector<1x32x96xf32> to vector<32x96xf32>
    %cst_57 = arith.constant dense<0.000000e+00> : vector<8x96xf32>
    %155 = tpu.matmul %139, %154, %cst_57 {dimension_numbers = #tpu.dot_dimension_numbers<[1], [0], [0], [1], [0, 0, 1, 1], [], []>} : vector<8x32xf32>, vector<32x96xf32>, vector<8x96xf32> -> vector<8x96xf32>
    %156 = vector.broadcast %142 : vector<1x96xf32> to vector<8x96xf32>
    %157 = arith.addf %155, %156 : vector<8x96xf32>
    %158 = vector.extract_strided_slice %157 {offsets = [0, 0], sizes = [8, 8], strides = [1, 1]} : vector<8x96xf32> to vector<8x8xf32>
    %159 = vector.shape_cast %158 : vector<8x8xf32> to vector<1x8x8xf32>
    %160 = vector.extract_strided_slice %157 {offsets = [0, 8], sizes = [8, 8], strides = [1, 1]} : vector<8x96xf32> to vector<8x8xf32>
    %161 = vector.shape_cast %160 : vector<8x8xf32> to vector<1x8x8xf32>
    %162 = vector.extract_strided_slice %157 {offsets = [0, 16], sizes = [8, 8], strides = [1, 1]} : vector<8x96xf32> to vector<8x8xf32>
    %163 = vector.shape_cast %162 : vector<8x8xf32> to vector<1x8x8xf32>
    %164 = vector.extract_strided_slice %157 {offsets = [0, 24], sizes = [8, 8], strides = [1, 1]} : vector<8x96xf32> to vector<8x8xf32>
    %165 = vector.shape_cast %164 : vector<8x8xf32> to vector<1x8x8xf32>
    %166 = tpu.concatenate %159, %161, %163, %165 in 0 : vector<1x8x8xf32>, vector<1x8x8xf32>, vector<1x8x8xf32>, vector<1x8x8xf32> -> vector<4x8x8xf32>
    %167 = vector.extract_strided_slice %157 {offsets = [0, 32], sizes = [8, 8], strides = [1, 1]} : vector<8x96xf32> to vector<8x8xf32>
    %168 = vector.shape_cast %167 : vector<8x8xf32> to vector<1x8x8xf32>
    %169 = vector.extract_strided_slice %157 {offsets = [0, 40], sizes = [8, 8], strides = [1, 1]} : vector<8x96xf32> to vector<8x8xf32>
    %170 = vector.shape_cast %169 : vector<8x8xf32> to vector<1x8x8xf32>
    %171 = vector.extract_strided_slice %157 {offsets = [0, 48], sizes = [8, 8], strides = [1, 1]} : vector<8x96xf32> to vector<8x8xf32>
    %172 = vector.shape_cast %171 : vector<8x8xf32> to vector<1x8x8xf32>
    %173 = vector.extract_strided_slice %157 {offsets = [0, 56], sizes = [8, 8], strides = [1, 1]} : vector<8x96xf32> to vector<8x8xf32>
    %174 = vector.shape_cast %173 : vector<8x8xf32> to vector<1x8x8xf32>
    %175 = tpu.concatenate %168, %170, %172, %174 in 0 : vector<1x8x8xf32>, vector<1x8x8xf32>, vector<1x8x8xf32>, vector<1x8x8xf32> -> vector<4x8x8xf32>
    %176 = vector.extract_strided_slice %157 {offsets = [0, 64], sizes = [8, 8], strides = [1, 1]} : vector<8x96xf32> to vector<8x8xf32>
    %177 = vector.shape_cast %176 : vector<8x8xf32> to vector<1x8x8xf32>
    %178 = vector.extract_strided_slice %157 {offsets = [0, 72], sizes = [8, 8], strides = [1, 1]} : vector<8x96xf32> to vector<8x8xf32>
    %179 = vector.shape_cast %178 : vector<8x8xf32> to vector<1x8x8xf32>
    %180 = vector.extract_strided_slice %157 {offsets = [0, 80], sizes = [8, 8], strides = [1, 1]} : vector<8x96xf32> to vector<8x8xf32>
    %181 = vector.shape_cast %180 : vector<8x8xf32> to vector<1x8x8xf32>
    %182 = vector.extract_strided_slice %157 {offsets = [0, 88], sizes = [8, 8], strides = [1, 1]} : vector<8x96xf32> to vector<8x8xf32>
    %183 = vector.shape_cast %182 : vector<8x8xf32> to vector<1x8x8xf32>
    %184 = tpu.concatenate %177, %179, %181, %183 in 0 : vector<1x8x8xf32>, vector<1x8x8xf32>, vector<1x8x8xf32>, vector<1x8x8xf32> -> vector<4x8x8xf32>
    %cst_58 = arith.constant dense<0.000000e+00> : vector<4x8x8xf32>
    %185 = tpu.matmul %166, %175, %cst_58 {dimension_numbers = #tpu.dot_dimension_numbers<[2], [2], [1], [1], [0, 0, 0, 1, 1, 1], [0], [0]>} : vector<4x8x8xf32>, vector<4x8x8xf32>, vector<4x8x8xf32> -> vector<4x8x8xf32>
    %cst_59 = arith.constant 0.353553385 : f32
    %186 = vector.broadcast %cst_59 : f32 to vector<4x8x8xf32>
    %187 = arith.mulf %185, %186 : vector<4x8x8xf32>
    %cst_60 = arith.constant dense<0xFF800000> : vector<4x8xf32>
    %188 = vector.multi_reduction <maximumf>, %187, %cst_60 [2] : vector<4x8x8xf32> to vector<4x8xf32>
    %189 = vector.shape_cast %188 : vector<4x8xf32> to vector<4x8x1xf32>
    %190 = vector.broadcast %189 : vector<4x8x1xf32> to vector<4x8x8xf32>
    %191 = arith.subf %187, %190 : vector<4x8x8xf32>
    %192 = math.exp %191 : vector<4x8x8xf32>
    %cst_61 = arith.constant dense<0.000000e+00> : vector<4x8xf32>
    %193 = vector.multi_reduction <add>, %192, %cst_61 [2] : vector<4x8x8xf32> to vector<4x8xf32>
    %194 = vector.shape_cast %193 : vector<4x8xf32> to vector<4x8x1xf32>
    %195 = tpu.reciprocal %194 {approx = true} : vector<4x8x1xf32> -> vector<4x8x1xf32>
    %196 = vector.broadcast %195 : vector<4x8x1xf32> to vector<4x8x8xf32>
    %197 = arith.mulf %192, %196 : vector<4x8x8xf32>
    %cst_62 = arith.constant dense<0.000000e+00> : vector<4x8x8xf32>
    %198 = tpu.matmul %197, %184, %cst_62 {dimension_numbers = #tpu.dot_dimension_numbers<[2], [1], [1], [2], [0, 0, 0, 1, 1, 2], [0], [0]>} : vector<4x8x8xf32>, vector<4x8x8xf32>, vector<4x8x8xf32> -> vector<4x8x8xf32>
    %199 = arith.index_cast %c1_i32 : i32 to index
    %c0_63 = arith.constant 0 : index
    %c0_64 = arith.constant 0 : index
    %c0_65 = arith.constant 0 : index
    %200 = vector.load %arg4[%199, %c0_63, %c0_64, %c0_65] : memref<2x4x8x32xf32, #tpu.memory_space<vmem>>, vector<1x4x8x32xf32>
    %201 = vector.shape_cast %200 : vector<1x4x8x32xf32> to vector<4x8x32xf32>
    %cst_66 = arith.constant dense<0.000000e+00> : vector<4x8x32xf32>
    %202 = tpu.matmul %198, %201, %cst_66 {dimension_numbers = #tpu.dot_dimension_numbers<[2], [1], [1], [2], [0, 0, 0, 1, 1, 2], [0], [0]>} : vector<4x8x8xf32>, vector<4x8x32xf32>, vector<4x8x32xf32> -> vector<4x8x32xf32>
    %cst_67 = arith.constant dense<0.000000e+00> : vector<8x32xf32>
    %203 = vector.multi_reduction <add>, %202, %cst_67 [0] : vector<4x8x32xf32> to vector<8x32xf32>
    %204 = vector.broadcast %145 : vector<1x32xf32> to vector<8x32xf32>
    %205 = arith.addf %203, %204 : vector<8x32xf32>
    %206 = arith.addf %139, %205 : vector<8x32xf32>
    %207 = arith.index_cast %c1_i32 : i32 to index
    %c0_68 = arith.constant 0 : index
    %c0_69 = arith.constant 0 : index
    %208 = vector.load %arg6[%207, %c0_68, %c0_69] : memref<2x1x32xf32, #tpu.memory_space<vmem>>, vector<1x1x32xf32>
    %209 = vector.shape_cast %208 : vector<1x1x32xf32> to vector<1x32xf32>
    %210 = arith.index_cast %c1_i32 : i32 to index
    %c0_70 = arith.constant 0 : index
    %c0_71 = arith.constant 0 : index
    %211 = vector.load %arg7[%210, %c0_70, %c0_71] : memref<2x1x32xf32, #tpu.memory_space<vmem>>, vector<1x1x32xf32>
    %212 = vector.shape_cast %211 : vector<1x1x32xf32> to vector<1x32xf32>
    %cst_72 = arith.constant dense<0.000000e+00> : vector<8xf32>
    %213 = vector.multi_reduction <add>, %206, %cst_72 [1] : vector<8x32xf32> to vector<8xf32>
    %214 = vector.shape_cast %213 : vector<8xf32> to vector<8x1xf32>
    %cst_73 = arith.constant 3.200000e+01 : f32
    %215 = vector.broadcast %cst_73 : f32 to vector<8x1xf32>
    %216 = arith.divf %214, %215 : vector<8x1xf32>
    %217 = arith.mulf %206, %206 : vector<8x32xf32>
    %cst_74 = arith.constant dense<0.000000e+00> : vector<8xf32>
    %218 = vector.multi_reduction <add>, %217, %cst_74 [1] : vector<8x32xf32> to vector<8xf32>
    %219 = vector.shape_cast %218 : vector<8xf32> to vector<8x1xf32>
    %cst_75 = arith.constant 3.200000e+01 : f32
    %220 = vector.broadcast %cst_75 : f32 to vector<8x1xf32>
    %221 = arith.divf %219, %220 : vector<8x1xf32>
    %222 = arith.mulf %216, %216 : vector<8x1xf32>
    %223 = arith.subf %221, %222 : vector<8x1xf32>
    %cst_76 = arith.constant 9.99999974E-6 : f32
    %224 = vector.broadcast %cst_76 : f32 to vector<8x1xf32>
    %225 = arith.addf %223, %224 : vector<8x1xf32>
    %226 = math.rsqrt %225 : vector<8x1xf32>
    %227 = vector.broadcast %216 : vector<8x1xf32> to vector<8x32xf32>
    %228 = arith.subf %206, %227 : vector<8x32xf32>
    %229 = vector.broadcast %226 : vector<8x1xf32> to vector<8x32xf32>
    %230 = vector.broadcast %209 : vector<1x32xf32> to vector<8x32xf32>
    %231 = arith.mulf %229, %230 : vector<8x32xf32>
    %232 = arith.mulf %228, %231 : vector<8x32xf32>
    %233 = vector.broadcast %212 : vector<1x32xf32> to vector<8x32xf32>
    %234 = arith.addf %232, %233 : vector<8x32xf32>
    %235 = arith.index_cast %c1_i32 : i32 to index
    %c0_77 = arith.constant 0 : index
    %c0_78 = arith.constant 0 : index
    %236 = vector.load %arg8[%235, %c0_77, %c0_78] : memref<2x32x64xf32, #tpu.memory_space<vmem>>, vector<1x32x64xf32>
    %237 = vector.shape_cast %236 : vector<1x32x64xf32> to vector<32x64xf32>
    %cst_79 = arith.constant dense<0.000000e+00> : vector<8x64xf32>
    %238 = tpu.matmul %234, %237, %cst_79 {dimension_numbers = #tpu.dot_dimension_numbers<[1], [0], [0], [1], [0, 0, 1, 1], [], []>} : vector<8x32xf32>, vector<32x64xf32>, vector<8x64xf32> -> vector<8x64xf32>
    %239 = vector.broadcast %148 : vector<1x64xf32> to vector<8x64xf32>
    %240 = arith.addf %238, %239 : vector<8x64xf32>
    %cst_80 = arith.constant 0.000000e+00 : f32
    %241 = vector.broadcast %cst_80 : f32 to vector<8x64xf32>
    %242 = arith.maximumf %240, %241 : vector<8x64xf32>
    %243 = arith.index_cast %c1_i32 : i32 to index
    %c0_81 = arith.constant 0 : index
    %c0_82 = arith.constant 0 : index
    %244 = vector.load %arg10[%243, %c0_81, %c0_82] : memref<2x64x32xf32, #tpu.memory_space<vmem>>, vector<1x64x32xf32>
    %245 = vector.shape_cast %244 : vector<1x64x32xf32> to vector<64x32xf32>
    %cst_83 = arith.constant dense<0.000000e+00> : vector<8x32xf32>
    %246 = tpu.matmul %242, %245, %cst_83 {dimension_numbers = #tpu.dot_dimension_numbers<[1], [0], [0], [1], [0, 0, 1, 1], [], []>} : vector<8x64xf32>, vector<64x32xf32>, vector<8x32xf32> -> vector<8x32xf32>
    %247 = vector.broadcast %151 : vector<1x32xf32> to vector<8x32xf32>
    %248 = arith.addf %246, %247 : vector<8x32xf32>
    %249 = arith.addf %234, %248 : vector<8x32xf32>
    %250 = arith.index_cast %c1_i32 : i32 to index
    %c0_84 = arith.constant 0 : index
    %c0_85 = arith.constant 0 : index
    %251 = vector.load %arg12[%250, %c0_84, %c0_85] : memref<2x1x32xf32, #tpu.memory_space<vmem>>, vector<1x1x32xf32>
    %252 = vector.shape_cast %251 : vector<1x1x32xf32> to vector<1x32xf32>
    %253 = arith.index_cast %c1_i32 : i32 to index
    %c0_86 = arith.constant 0 : index
    %c0_87 = arith.constant 0 : index
    %254 = vector.load %arg13[%253, %c0_86, %c0_87] : memref<2x1x32xf32, #tpu.memory_space<vmem>>, vector<1x1x32xf32>
    %255 = vector.shape_cast %254 : vector<1x1x32xf32> to vector<1x32xf32>
    %cst_88 = arith.constant dense<0.000000e+00> : vector<8xf32>
    %256 = vector.multi_reduction <add>, %249, %cst_88 [1] : vector<8x32xf32> to vector<8xf32>
    %257 = vector.shape_cast %256 : vector<8xf32> to vector<8x1xf32>
    %cst_89 = arith.constant 3.200000e+01 : f32
    %258 = vector.broadcast %cst_89 : f32 to vector<8x1xf32>
    %259 = arith.divf %257, %258 : vector<8x1xf32>
    %260 = arith.mulf %249, %249 : vector<8x32xf32>
    %cst_90 = arith.constant dense<0.000000e+00> : vector<8xf32>
    %261 = vector.multi_reduction <add>, %260, %cst_90 [1] : vector<8x32xf32> to vector<8xf32>
    %262 = vector.shape_cast %261 : vector<8xf32> to vector<8x1xf32>
    %cst_91 = arith.constant 3.200000e+01 : f32
    %263 = vector.broadcast %cst_91 : f32 to vector<8x1xf32>
    %264 = arith.divf %262, %263 : vector<8x1xf32>
    %265 = arith.mulf %259, %259 : vector<8x1xf32>
    %266 = arith.subf %264, %265 : vector<8x1xf32>
    %cst_92 = arith.constant 9.99999974E-6 : f32
    %267 = vector.broadcast %cst_92 : f32 to vector<8x1xf32>
    %268 = arith.addf %266, %267 : vector<8x1xf32>
    %269 = math.rsqrt %268 : vector<8x1xf32>
    %270 = vector.broadcast %259 : vector<8x1xf32> to vector<8x32xf32>
    %271 = arith.subf %249, %270 : vector<8x32xf32>
    %272 = vector.broadcast %269 : vector<8x1xf32> to vector<8x32xf32>
    %273 = vector.broadcast %252 : vector<1x32xf32> to vector<8x32xf32>
    %274 = arith.mulf %272, %273 : vector<8x32xf32>
    %275 = arith.mulf %271, %274 : vector<8x32xf32>
    %276 = vector.broadcast %255 : vector<1x32xf32> to vector<8x32xf32>
    %277 = arith.addf %275, %276 : vector<8x32xf32>
    %c2_i32 = arith.constant 2 : i32
    %278 = vector.shape_cast %277 : vector<8x32xf32> to vector<1x8x32xf32>
    %279 = vector.extract_strided_slice %278 {offsets = [0, 7, 0], sizes = [1, 1, 32], strides = [1, 1, 1]} : vector<1x8x32xf32> to vector<1x1x32xf32>
    %280 = vector.shape_cast %279 : vector<1x1x32xf32> to vector<1x32xf32>
    %c0_93 = arith.constant 0 : index
    %c0_94 = arith.constant 0 : index
    %c0_95 = arith.constant 0 : index
    %281 = vector.load %arg14[%c0_93, %c0_94, %c0_95] : memref<1x1x32xf32, #tpu.memory_space<vmem>>, vector<1x1x32xf32>
    %282 = vector.shape_cast %281 : vector<1x1x32xf32> to vector<1x32xf32>
    %283 = vector.shape_cast %280 : vector<1x32xf32> to vector<1x1x32xf32>
    tpu.vector_store %arg14[%c0_93, %c0_94, %c0_95], %283 {strides = array<i32>} : memref<1x1x32xf32, #tpu.memory_space<vmem>>, vector<1x1x32xf32>,
    return
  }
  func.func @transform_0(%arg0: i32) -> (i32, i32, i32) {
    %c0_i32 = arith.constant 0 : i32
    %c0_i32_0 = arith.constant 0 : i32
    %c0_i32_1 = arith.constant 0 : i32
    return %arg0, %c0_i32, %c0_i32_0 : i32, i32, i32
  }
  func.func @transform_1(%arg0: i32) -> (i32, i32, i32) {
    %c0_i32 = arith.constant 0 : i32
    %c0_i32_0 = arith.constant 0 : i32
    %c0_i32_1 = arith.constant 0 : i32
    %c0_i32_2 = arith.constant 0 : i32
    return %c0_i32, %c0_i32_0, %c0_i32_1 : i32, i32, i32
  }
  func.func @transform_2(%arg0: i32) -> (i32, i32, i32) {
    %c0_i32 = arith.constant 0 : i32
    %c0_i32_0 = arith.constant 0 : i32
    %c0_i32_1 = arith.constant 0 : i32
    %c0_i32_2 = arith.constant 0 : i32
    return %c0_i32, %c0_i32_0, %c0_i32_1 : i32, i32, i32
  }
  func.func @transform_3(%arg0: i32) -> (i32, i32, i32, i32) {
    %c0_i32 = arith.constant 0 : i32
    %c0_i32_0 = arith.constant 0 : i32
    %c0_i32_1 = arith.constant 0 : i32
    %c0_i32_2 = arith.constant 0 : i32
    %c0_i32_3 = arith.constant 0 : i32
    return %c0_i32, %c0_i32_0, %c0_i32_1, %c0_i32_2 : i32, i32, i32, i32
  }
  func.func @transform_4(%arg0: i32) -> (i32, i32, i32) {
    %c0_i32 = arith.constant 0 : i32
    %c0_i32_0 = arith.constant 0 : i32
    %c0_i32_1 = arith.constant 0 : i32
    %c0_i32_2 = arith.constant 0 : i32
    return %c0_i32, %c0_i32_0, %c0_i32_1 : i32, i32, i32
  }
  func.func @transform_5(%arg0: i32) -> (i32, i32, i32) {
    %c0_i32 = arith.constant 0 : i32
    %c0_i32_0 = arith.constant 0 : i32
    %c0_i32_1 = arith.constant 0 : i32
    %c0_i32_2 = arith.constant 0 : i32
    return %c0_i32, %c0_i32_0, %c0_i32_1 : i32, i32, i32
  }
  func.func @transform_6(%arg0: i32) -> (i32, i32, i32) {
    %c0_i32 = arith.constant 0 : i32
    %c0_i32_0 = arith.constant 0 : i32
    %c0_i32_1 = arith.constant 0 : i32
    %c0_i32_2 = arith.constant 0 : i32
    return %c0_i32, %c0_i32_0, %c0_i32_1 : i32, i32, i32
  }
  func.func @transform_7(%arg0: i32) -> (i32, i32, i32) {
    %c0_i32 = arith.constant 0 : i32
    %c0_i32_0 = arith.constant 0 : i32
    %c0_i32_1 = arith.constant 0 : i32
    %c0_i32_2 = arith.constant 0 : i32
    return %c0_i32, %c0_i32_0, %c0_i32_1 : i32, i32, i32
  }
  func.func @transform_8(%arg0: i32) -> (i32, i32, i32) {
    %c0_i32 = arith.constant 0 : i32
    %c0_i32_0 = arith.constant 0 : i32
    %c0_i32_1 = arith.constant 0 : i32
    %c0_i32_2 = arith.constant 0 : i32
    return %c0_i32, %c0_i32_0, %c0_i32_1 : i32, i32, i32
  }
  func.func @transform_9(%arg0: i32) -> (i32, i32, i32) {
    %c0_i32 = arith.constant 0 : i32
    %c0_i32_0 = arith.constant 0 : i32
    %c0_i32_1 = arith.constant 0 : i32
    %c0_i32_2 = arith.constant 0 : i32
    return %c0_i32, %c0_i32_0, %c0_i32_1 : i32, i32, i32
  }
  func.func @transform_10(%arg0: i32) -> (i32, i32, i32) {
    %c0_i32 = arith.constant 0 : i32
    %c0_i32_0 = arith.constant 0 : i32
    %c0_i32_1 = arith.constant 0 : i32
    %c0_i32_2 = arith.constant 0 : i32
    return %c0_i32, %c0_i32_0, %c0_i32_1 : i32, i32, i32
  }
  func.func @transform_11(%arg0: i32) -> (i32, i32, i32) {
    %c0_i32 = arith.constant 0 : i32
    %c0_i32_0 = arith.constant 0 : i32
    %c0_i32_1 = arith.constant 0 : i32
    %c0_i32_2 = arith.constant 0 : i32
    return %c0_i32, %c0_i32_0, %c0_i32_1 : i32, i32, i32
  }
  func.func @transform_12(%arg0: i32) -> (i32, i32, i32) {
    %c0_i32 = arith.constant 0 : i32
    %c0_i32_0 = arith.constant 0 : i32
    %c0_i32_1 = arith.constant 0 : i32
    %c0_i32_2 = arith.constant 0 : i32
    return %c0_i32, %c0_i32_0, %c0_i32_1 : i32, i32, i32
  }
  func.func @transform_13(%arg0: i32) -> (i32, i32, i32) {
    %c0_i32 = arith.constant 0 : i32
    %c0_i32_0 = arith.constant 0 : i32
    %c0_i32_1 = arith.constant 0 : i32
    return %arg0, %c0_i32, %c0_i32_0 : i32, i32, i32
  }
}

</mosaic_0001>

<bundles_post_ra>
// kernel: tpu_custom_call.1
= control target key start
LH: loop header
LB: loop body
LE: loop exit
PB: predicated region body
PF: predicated region fallthrough
CT: control target
= control target key end

     0   :  { %18 = vsyncpa [#allocation3], 0  ;;  %s4398_s0 = inlined_call_operand.hbm [shape: f32[2,8,32], index: 0, kind: input, shape index: {}]   ;;  %s4399_s1 = inlined_call_operand.vmem [shape: f32[2,32,96], index: 1, kind: input, shape index: {}]   ;;  %s4400_s2 = inlined_call_operand.vmem [shape: f32[2,1,96], index: 2, kind: input, shape index: {}]   ;;  %s4401_s3 = inlined_call_operand.vmem [shape: f32[2,4,8,32], index: 3, kind: input, shape index: {}]   ;;  %s4402_s4 = inlined_call_operand.vmem [shape: f32[2,1,32], index: 4, kind: input, shape index: {}]   ;;  %s4403_s5 = inlined_call_operand.vmem [shape: f32[2,1,32], index: 5, kind: input, shape index: {}]   ;;  %s4404_s6 = inlined_call_operand.vmem [shape: f32[2,1,32], index: 6, kind: input, shape index: {}]   ;;  %s4405_s7 = inlined_call_operand.vmem [shape: f32[2,32,64], index: 7, kind: input, shape index: {}]   ;;  %s4406_s8 = inlined_call_operand.vmem [shape: f32[2,1,64], index: 8, kind: input, shape index: {}]   ;;  %s4407_s9 = inlined_call_operand.vmem [shape: f32[2,64,32], index: 9, kind: input, shape index: {}]   ;;  %s4408_s10 = inlined_call_operand.vmem [shape: f32[2,1,32], index: 10, kind: input, shape index: {}]   ;;  %s4409_s11 = inlined_call_operand.vmem [shape: f32[2,1,32], index: 11, kind: input, shape index: {}]   ;;  %s4410_s12 = inlined_call_operand.vmem [shape: f32[2,1,32], index: 12, kind: input, shape index: {}]   ;;  %s4411_s13 = inlined_call_operand.hbm [shape: f32[2,1,32], index: 13, kind: output, shape index: {}]  }
   0x1   :  { %20 = vsyncpa [#allocation3 + $0x1], 0 }
   0x2   :  { %21 = vsyncpa [#allocation4], 0 }
   0x3   :  { %23 = vsyncpa [#allocation4 + $0x1], 0  ;;  %s3843_s25 = smov 0   ;;  %s3845_s26 = smov 0  }
   0x4   :  { %s3847_s27 = smov 0   ;;  %s3849_s28 = smov 0  }
   0x5 LB: > { %4423 = sst [smem:[#allocation8_spill]] %s3749_s25  ;;  %s3864_s29 = sadd.s32 4294967295, %s3761_s28   ;;  %s3761_s28 = sphi %s3849_s28, %s4442_s28   ;;  %s3757_s27 = sphi %s3847_s27, %s4444_s27   ;;  %s3753_s26 = sphi %s3845_s26, %s4446_s26   ;;  %s3749_s25 = sphi %s3843_s25, %s4445_s25  }
   0x6   : > { %4424 = sst [smem:[#allocation9_spill]] %s3757_s27  ;;  %s3143_s30 = sadd.s32 4294967294, %s3761_s28  }
   0x7   : > { %s3868_s14 = sadd.s32 1, %s3761_s28   ;;  %s36_s15 = sadd.s32 1, %s3757_s27 }
   0x8   : > { %4425 = sst [smem:[#allocation10_spill]] %s3868_s14  ;;  %s33_s16 = ssub.s32 %s3761_s28, %s3868_s14 }
   0x9   : > { %p43_p0 = scmp.ne.s32.totalorder %s3757_s27, %s3753_s26  ;;  %p34_p1 = scmp.eq.s32.totalorder %s33_s16, 0 }
   0xa   : > { %p44_p2 = scmp.eq.s32.totalorder %s3761_s28, 0  ;;  %p49_p3 = scmp.ne.s32.totalorder %s3753_s26, %s3749_s25 }
   0xb   : > { %p50_p4 = scmp.eq.s32.totalorder %s3864_s29, 0  ;;  %p325_p7 = scmp.eq.s32.totalorder %s3864_s29, 1 }
   0xc   : > { %s3880_s17 = scalar_select %p34_p1, %s3757_s27, %s36_s15  }
   0xd   : > { %p3882_p5 = por %p44_p2, %p43_p0  ;;  %p3886_p6 = por %p50_p4, %p49_p3 }
   0xe   : > { %4426 = sst [smem:[#allocation11_spill]] %s3880_s17  ;;  %p331_p8 = scmp.eq.s32.totalorder %s3143_s30, 1 }
   0xf   : > { %p3583_p10 = scmp.lt.s32.totalorder %s3761_s28, 2  ;;  %p3893_p11 = por %p325_p7, %p43_p0 }
  0x10   : > { %p3897_p12 = por %p331_p8, %p49_p3  ;;  %s387_s22 = sand.u32 1, %s3757_s27  }
  0x11   : > { %s4429_s20 = scalar_select %p3893_p11, 1, 0 }
  0x12   : > { %s4430_s21 = scalar_select %p3897_p12, 1, 0 }
  0x13   : > { %s3147_s23 = sshll.u32 %s3761_s28, 7  ;;  %s3146_s24 = sshll.u32 %s387_s22, 3 }
  0x14   : > { %s3906_s17 = scalar_lea.hbm %s4398_s0, %s3147_s23  ;;  %s391_s30 = scalar_lea.vmem [#allocation2], %s3146_s24 }
  0x15   : > { %s398_s14 = sshll.u32 %s391_s30, 4  ;;  %p3910_p13 = pnand %p3583_p10, %p3882_p5  ;;  %s3914_s14 = int_to_ptr.vmem [resolvable:$true] %s398_s14 }
  0x16   : > { %s388_s15 = scalar_lea.sflag [#allocation3], %s387_s22  ;;  %s3665_s23 = scalar_lea.hbm %s3906_s17, 128 }
  0x17   : > { %p3666_p2 = scmp.ne.s32.totalorder %s3906_s17, %s3665_s23  ;;  %p3667_p3 = pneg %p3910_p13 }
  0x18   : > { %s3670_s16 = scalar_lea.hbm %s4398_s0, 256  ;;  %p3671_p5 = scmp.lt.u32.totalorder %s3906_s17, %s4398_s0 }
  0x19   : > { %p3668_p4 = pnand %p3667_p3, %p3666_p2  ;;  %p3672_p8 = scmp.lt.u32.totalorder %s3670_s16, %s3665_s23 }
  0x1a   : > { %p3674_p9 = scmp.lt.u32.totalorder %s3665_s23, %s3906_s17 }
  0x1b   : > { %p3669_p7 = pneg %p3668_p4  ;;  %p3673_p10 = por %p3672_p8, %p3671_p5 }
  0x1d   : > { %p3675_p0 = por %p3674_p9, %p3673_p10 }
  0x1f   : > { %p3676_p1 = pnand %p3675_p0, %p3669_p7 }
  0x21   : > { %3679 = shalt.err (!%p3676_p1)
}
  0x22   : > { %s3680_s22 = scalar_lea.vmem %s3914_s14, 128  ;;  %s3763_s18 = smov [#allocation2]  }
  0x23   : > { %p3681_p2 = scmp.ne.s32.totalorder %s3914_s14, %s3680_s22  ;;  %s3685_s24 = sshll.u32 %s3763_s18, 4  ;;  %s3686_s24 = int_to_ptr.vmem [resolvable:$false] %s3685_s24 }
  0x24   : > { %s3687_s27 = scalar_lea.vmem %s3686_s24, 256  ;;  %p3688_p11 = scmp.lt.s32.totalorder %s3914_s14, %s3686_s24 }
  0x25   : > { %p3683_p4 = pnand %p3681_p2, %p3667_p3  ;;  %p3689_p5 = scmp.lt.s32.totalorder %s3687_s27, %s3680_s22 }
  0x27   : > { %p3684_p12 = pneg %p3683_p4  ;;  %p3690_p8 = por %p3689_p5, %p3688_p11 }
  0x29   : > { %p3691_p9 = pnand %p3690_p8, %p3684_p12 }
  0x2b   : > { %3694 = shalt.err (!%p3691_p9)
}
  0x2c   : > { %3578 = dma.hbm_to_vmem [thread:$0]  (!%p3910_p13), %s3906_s17, 128, %s3914_s14, %s388_s15  }
  0x2d   : > { %p4432_p0 = scmp.lt.s32.totalorder %s3761_s28, 3  ;;  %p4433_p1 = scmp.ge.s32.totalorder %s3761_s28, 1 }
  0x2f   : > { %p404_p3 = pnand %p4433_p1, %p4432_p0 }
  0x30   : > { %s3948_s23 = sand.u32 (!%p404_p3), 1, %s3753_s26  }
  0x31   : > { %407 = sbr.rel (%p404_p3) target bundleno = 4442 (0x115a), region = 72  ;;  %s3149_s16 = sshll.u32 (!%p404_p3), %s3948_s23, 3 }
  0x32   : > { %s410_s30 = scalar_lea.sflag (!%p404_p3), [#allocation3], %s3948_s23  ;;  %s413_s22 = scalar_lea.vmem (!%p404_p3), [#allocation2], %s3149_s16 }
  0x38   : > { %3740 = dma.done.wait (%p3886_p6), %s410_s30, 128  }
  0x39   : > { %3742 = vsyncadd (%p3886_p6), %s410_s30, 4294967168  ;;  %v3764_v0 = vmov 0.0|0.0   ;;  %vm3765_vm0 = vmmov 0   ;;  %v3766_v1 = vmov 0.0   ;;  %v460_v2 = vld [vmem:[%s4399_s1] sm:$0xff]  ;;  %v461_v3 = vld [vmem:[%s4399_s1 + $0x8] sm:$0xff] }
  0x3a   : > { %3523 = vmatprep.subr.bf16.mxu0 %v3764_v0  ;;  %3329 = vmatprep.mubr.msk.f32.mxu0 %vm3765_vm0, %v3766_v1  ;;  %v462_v4 = vld [vmem:[%s4399_s1 + $0x10] sm:$0xff]  ;;  %v3524_v5 = vpack.c.bf16 %v461_v3, %v460_v2  ;;  %v463_v6 = vld [vmem:[%s4399_s1 + $0x18] sm:$0xff]  ;;  %v3975_v8 = vld [vmem:[%s413_s22] sm:$0xff]  ;;  %vm470_vm1 = vcmask 261120   ;;  %s4421_s25 = smov 104   ;;  %s4422_s22 = smov 120  }
  0x3b   : > { %3337 = vmatprep.subr.mxu1 %v3766_v1  ;;  %3339 = vmatprep.mubr.msk.f32.mxu1 %vm3765_vm0, %v3766_v1  ;;  %v3527_v7 = vpack.c.bf16 %v463_v6, %v462_v4  ;;  %v3150_v9 = vld [vmem:[%s4400_s2] ss:$0 sm:$0xff]  ;;  %s4419_s14 = smov 96   ;;  %s3770_s17 = smov 112   ;;  %vm553_vm2 = vcmask 64512   ;;  %vm1649_vm3 = vcmask 523264  }
  0x3c   : > { %3525 = vmatpush3.bf16.msra.mxu0 %v3524_v5  ;;  %s4417_s19 = smov 64   ;;  %s4435_s27 = smov 104   ;;  %vm3062_vm4 = vcmask 261127  }
  0x3d   : > { %3526 = vmatprep.subr.bf16.mxu0 %v3764_v0  ;;  %s4436_s16 = smov 96   ;;  %s454_s15 = scalar_lea.vmem [#allocation5], %s3948_s23 }
  0x3e   : > { %s3077_s18 = sshll.u32 %s454_s15, 4  ;;  %p4438_p11 = scmp.ne.s32.totalorder %s4429_s20, 0  ;;  %s4356_s18 = int_to_ptr.vmem [resolvable:$true] %s3077_s18 }
  0x40   : > { %3528 = vmatpush3.bf16.msra.mxu0 %v3527_v7 }
  0x41   : > { %3332 = vmatprep.subr.mxu0 %v3766_v1 }
  0x43   : > { %3330 = vmatmul.mubr.msk.f32.vlgmr.msra.gmra.mrb[0].mxu0 %vm470_vm1, %v3975_v8 }
  0x44   : > { %3334 = vmatprep.mubr.msk.f32.mxu0 %vm3765_vm0, %v3766_v1 }
 0x116   : > { %v540_v10 = vpop.f32.mrb[0].mxu0 }
 0x117   : > { %v541_v11 = vadd.f32 %v3150_v9, %v540_v10  ;;  %v3331_v12 = vpop.f32.mrb[1].mxu0 }
 0x118   : > { %v1209_v12 = vld [vmem:[%s4401_s3 + $0x8] sm:$0xff] }
 0x119   : > { %549 = vrot.lane.b32.xlu1 %v541_v11, %s4421_s25  ;;  %545 = vrot.lane.b32.xlu0 %v541_v11, %s4422_s22  ;;  %s3232_s22 = sshll.u32 %s3864_s29, 4  ;;  %s3772_s29 = smov [#allocation5]  }
 0x11d   : > { %551 = vrot.lane.b32.xlu1 %v541_v11, %s4419_s14  ;;  %547 = vrot.lane.b32.xlu0 %v541_v11, %s3770_s17 }
 0x18b   : > { %v3989_v13 = vpop.permute.xlu1 %549  ;;  %v546_v14 = vpop.permute.xlu0 %545 }
 0x18c   : > { %628 = vrot.lane.b32.xlu0 %v546_v14, %s4419_s14 }
 0x18f   : > { %v552_v15 = vpop.permute.xlu1 %551  ;;  %v3992_v16 = vpop.permute.xlu0 %547 }
 0x190   : > { %3333 = vmatpush3.xpose.msk.msra.mxu0 %vm553_vm2, %v552_v15  ;;  %780 = vrot.lane.b32.xlu0 %v3989_v13, %s4419_s14 }
 0x191   : > { %704 = vrot.lane.b32.xlu1 %v3992_v16, %s4419_s14  ;;  %3342 = vmatprep.subr.mxu0 %v3766_v1 }
 0x193   : > { %3335 = vmatmul.mubr.msk.f32.vlgmr.msra.gmra.mrb[2].mxu0 %vm553_vm2, %v541_v11 }
 0x194   : > { %3344 = vmatprep.mubr.msk.f32.mxu0 %vm3765_vm0, %v3766_v1 }
 0x1fe   : > { %v629_v17 = vpop.permute.xlu0 %628 }
 0x1ff   : > { %3338 = vmatpush3.xpose.msk.msra.mxu1 %vm553_vm2, %v629_v17 }
 0x200   : > { %3347 = vmatprep.subr.mxu1 %v3766_v1 }
 0x202   : > { %3340 = vmatmul.mubr.msk.f32.vlgmr.msra.gmra.mrb[0].mxu1 %vm553_vm2, %v546_v14  ;;  %v781_v18 = vpop.permute.xlu0 %780 }
 0x203   : > { %v705_v19 = vpop.permute.xlu1 %704  ;;  %3348 = vmatpush3.xpose.msk.msra.mxu1 %vm553_vm2, %v781_v18  ;;  %3349 = vmatprep.mubr.msk.f32.mxu1 %vm3765_vm0, %v3766_v1 }
 0x204   : > { %3343 = vmatpush3.xpose.msk.msra.mxu0 %vm553_vm2, %v705_v19  ;;  %3357 = vmatprep.subr.mxu1 %v3766_v1 }
 0x205   : > { %3352 = vmatprep.subr.mxu0 %v3766_v1 }
 0x206   : > { %3350 = vmatmul.mubr.msk.f32.vlgmr.msra.gmra.mrb[2].mxu1 %vm553_vm2, %v3989_v13 }
 0x207   : > { %3345 = vmatmul.mubr.msk.f32.vlgmr.msra.gmra.mrb[4].mxu0 %vm553_vm2, %v3992_v16  ;;  %3359 = vmatprep.mubr.msk.f32.mxu1 %vm3765_vm0, %v3766_v1 }
 0x208   : > { %3354 = vmatprep.mubr.msk.f32.mxu0 %vm3765_vm0, %v3766_v1 }
 0x266   : > { %v624_v20 = vpop.f32.mrb[2].mxu0 }
 0x267   : > { %v856_v21 = vmul.f32 0.35355338, %v624_v20  ;;  %v3336_v22 = vpop.f32.mrb[3].mxu0 }
 0x269   : > { %v860_v23 = vsel %vm553_vm2, %v856_v21, -inf }
 0x26a   : > { %861 = vmax.xlane.f32.xlu1 %v860_v23 }
 0x2d5   : > { %v700_v24 = vpop.f32.mrb[0].mxu1 }
 0x2d6   : > { %v857_v25 = vmul.f32 0.35355338, %v700_v24  ;;  %v3341_v26 = vpop.f32.mrb[1].mxu1 }
 0x2d8   : > { %v863_v27 = vsel %vm553_vm2, %v857_v25, -inf }
 0x2d9   : > { %864 = vmax.xlane.f32.xlu0 %v863_v27  ;;  %v852_v28 = vpop.f32.mrb[2].mxu1 }
 0x2da   : > { %v776_v29 = vpop.f32.mrb[4].mxu0  ;;  %v859_v30 = vmul.f32 0.35355338, %v852_v28  ;;  %v3351_v31 = vpop.f32.mrb[3].mxu1 }
 0x2db   : > { %v858_v32 = vmul.f32 0.35355338, %v776_v29  ;;  %v3346_v33 = vpop.f32.mrb[5].mxu0 }
 0x2dc   : > { %v869_v34 = vsel %vm553_vm2, %v859_v30, -inf }
 0x2dd   : > { %870 = vmax.xlane.f32.xlu1 %v869_v34  ;;  %v866_v35 = vsel %vm553_vm2, %v858_v32, -inf }
 0x2de   : > { %867 = vmax.xlane.f32.xlu0 %v866_v35 }
 0x2ee   : > { %980 = vrot.lane.b32.xlu1 %v546_v14, %s4417_s19 }
 0x2f4   : > { %904 = vrot.lane.b32.xlu0 %v541_v11, %s4417_s19  ;;  %v1208_v11 = vld [vmem:[%s4401_s3] sm:$0xff] }
 0x2f7   : > { %v862_v36 = vpop.xlane.xlu1 %861 }
 0x2f8   : > { %v872_v37 = vsub.f32 %v856_v21, %v862_v36  ;;  %v3168_v36 = vld [vmem:[%s4402_s4] ss:$0 sm:$0xff] }
 0x2fa   : > { %v876_v38 = vmul.f32 1.442695, %v872_v37 }
 0x2fc   : > { %3625 = vpow2.f32 %v876_v38 }
 0x306   : > { %v3626_v39 = vpop.eup %3625 }
 0x307   : > { %v884_v40 = vsel %vm553_vm2, %v3626_v39, 0.0 }
 0x313   : > { %885 = vadd.xlane.f32.xlu0 %v884_v40 }
 0x366   : > { %v865_v41 = vpop.xlane.xlu0 %864 }
 0x367   : > { %v873_v42 = vsub.f32 %v857_v25, %v865_v41 }
 0x369   : > { %v878_v43 = vmul.f32 1.442695, %v873_v42 }
 0x36a   : > { %v871_v44 = vpop.xlane.xlu1 %870 }
 0x36b   : > { %3627 = vpow2.f32 %v878_v43  ;;  %v875_v45 = vsub.f32 %v859_v30, %v871_v44  ;;  %v868_v46 = vpop.xlane.xlu0 %867  ;;  %v1551_v44 = vld [vmem:[%s4405_s7] sm:$0xff] }
 0x36c   : > { %v874_v47 = vsub.f32 %v858_v32, %v868_v46 }
 0x36d   : > { %v882_v48 = vmul.f32 1.442695, %v875_v45  ;;  %v1552_v45 = vld [vmem:[%s4405_s7 + $0x8] sm:$0xff] }
 0x36e   : > { %v880_v49 = vmul.f32 1.442695, %v874_v47  ;;  %v981_v50 = vpop.permute.xlu1 %980  ;;  %v3530_v46 = vpack.c.bf16 %v1552_v45, %v1551_v44  ;;  %v1554_v47 = vld [vmem:[%s4405_s7 + $0x18] sm:$0xff]  ;;  %v3176_v44 = vld [vmem:[%s4410_s12] ss:$0 sm:$0xff] }
 0x36f   : > { %3629 = vpow2.f32 %v882_v48  ;;  %v905_v51 = vpop.permute.xlu0 %904  ;;  %3358 = vmatpush3.msra.mxu1 %v981_v50  ;;  %v1636_v50 = vld [vmem:[%s4407_s9 + $0x8] sm:$0xff] }
 0x370   : > { %3631 = vpow2.f32 %v880_v49  ;;  %3353 = vmatpush3.msra.mxu0 %v905_v51  ;;  %3367 = vmatprep.subr.mxu1 %v3766_v1  ;;  %v1635_v49 = vld [vmem:[%s4407_s9] sm:$0xff]  ;;  %v1637_v51 = vld [vmem:[%s4407_s9 + $0x10] sm:$0xff] }
 0x371   : > { %3362 = vmatprep.subr.mxu0 %v3766_v1 }
 0x375   : > { %v3628_v52 = vpop.eup %3627 }
 0x376   : > { %v887_v53 = vsel %vm553_vm2, %v3628_v52, 0.0 }
 0x377   : > { %888 = vadd.xlane.f32.xlu1 %v887_v53  ;;  %v1638_v53 = vld [vmem:[%s4407_s9 + $0x18] sm:$0xff] }
 0x379   : > { %v3630_v54 = vpop.eup %3629 }
 0x37a   : > { %v3632_v55 = vpop.eup %3631  ;;  %v893_v56 = vsel %vm553_vm2, %v3630_v54, 0.0 }
 0x37b   : > { %894 = vadd.xlane.f32.xlu1 %v893_v56  ;;  %v890_v57 = vsel %vm553_vm2, %v3632_v55, 0.0  ;;  %v1640_v56 = vld [vmem:[%s4407_s9 + $0x28] sm:$0xff] }
 0x37c   : > { %891 = vadd.xlane.f32.xlu0 %v890_v57 }
 0x38c   : > { %1056 = vrot.lane.b32.xlu1 %v3992_v16, %s4417_s19  ;;  %v1211_v16 = vld [vmem:[%s4401_s3 + $0x18] sm:$0xff] }
 0x392   : > { %1132 = vrot.lane.b32.xlu0 %v3989_v13, %s4417_s19  ;;  %v1210_v13 = vld [vmem:[%s4401_s3 + $0x10] sm:$0xff]  ;;  %s4434_s19 = smov 120  }
 0x3a0   : > { %v886_v58 = vpop.xlane.xlu0 %885 }
 0x3a1   : > { %3633 = vrcp.f32 %v886_v58 }
 0x3ab   : > { %v3634_v59 = vpop.eup %3633 }
 0x3ac   : > { %v900_v60 = vmul.f32 %v3634_v59, %v3626_v39 }
 0x3ae   : > { %3355 = vmatmul.mubr.msk.f32.vlgmr.msra.gmra.mrb[6].mxu0 %vm553_vm2, %v900_v60 }
 0x3af   : > { %3364 = vmatprep.mubr.msk.f32.mxu0 %vm3765_vm0, %v3766_v1 }
 0x404   : > { %v889_v61 = vpop.xlane.xlu1 %888 }
 0x405   : > { %3635 = vrcp.f32 %v889_v61 }
 0x408   : > { %v895_v62 = vpop.xlane.xlu1 %894 }
 0x409   : > { %3637 = vrcp.f32 %v895_v62  ;;  %v892_v63 = vpop.xlane.xlu0 %891 }
 0x40a   : > { %3639 = vrcp.f32 %v892_v63 }
 0x40c   : > { %v1057_v2 = vpop.permute.xlu1 %1056 }
 0x40d   : > { %3363 = vmatpush3.msra.mxu0 %v1057_v2  ;;  %v1133_v5 = vpop.permute.xlu0 %1132 }
 0x40e   : > { %3372 = vmatprep.subr.mxu0 %v3766_v1 }
 0x40f   : > { %v3636_v3 = vpop.eup %3635 }
 0x410   : > { %v901_v4 = vmul.f32 %v3636_v3, %v3628_v52  ;;  %v3536_v52 = vpack.c.bf16 %v1636_v50, %v1635_v49  ;;  %v3169_v3 = vld [vmem:[%s4403_s5] ss:$0 sm:$0xff] }
 0x412   : > { %3360 = vmatmul.mubr.msk.f32.vlgmr.msra.gmra.mrb[4].mxu1 %vm553_vm2, %v901_v4 }
 0x413   : > { %v3638_v6 = vpop.eup %3637  ;;  %3368 = vmatpush3.msra.mxu1 %v1133_v5  ;;  %3369 = vmatprep.mubr.msk.f32.mxu1 %vm3765_vm0, %v3766_v1 }
 0x414   : > { %v3640_v7 = vpop.eup %3639  ;;  %v903_v9 = vmul.f32 %v3638_v6, %v3630_v54  ;;  %3377 = vmatprep.subr.mxu1 %v3766_v1  ;;  %v3539_v54 = vpack.c.bf16 %v1638_v53, %v1637_v51 }
 0x415   : > { %v902_v10 = vmul.f32 %v3640_v7, %v3632_v55  ;;  %v1639_v55 = vld [vmem:[%s4407_s9 + $0x20] sm:$0xff] }
 0x416   : > { %3370 = vmatmul.mubr.msk.f32.vlgmr.msra.gmra.mrb[6].mxu1 %vm553_vm2, %v903_v9  ;;  %v3542_v57 = vpack.c.bf16 %v1640_v56, %v1639_v55  ;;  %v3170_v7 = vld [vmem:[%s4404_s6] ss:$0 sm:$0xff] }
 0x417   : > { %3365 = vmatmul.mubr.msk.f32.vlgmr.msra.gmra.mrb[8].mxu0 %vm553_vm2, %v902_v10  ;;  %3379 = vmatprep.mubr.msk.f32.mxu1 %vm3765_vm0, %v3766_v1 }
 0x418   : > { %3373 = vmatpush3.msra.mxu0 %v1208_v11  ;;  %3374 = vmatprep.mubr.msk.f32.mxu0 %vm3765_vm0, %v3766_v1  ;;  %v1641_v11 = vld [vmem:[%s4407_s9 + $0x30] sm:$0xff] }
 0x419   : > { %3382 = vmatprep.subr.mxu0 %v3766_v1  ;;  %3378 = vmatpush3.msra.mxu1 %v1209_v12  ;;  %v1642_v12 = vld [vmem:[%s4407_s9 + $0x38] sm:$0xff] }
 0x41a   : > { %3387 = vmatprep.subr.mxu1 %v3766_v1 }
 0x481   : > { %v976_v14 = vpop.f32.mrb[6].mxu0 }
 0x482   : > { %v3356_v15 = vpop.f32.mrb[7].mxu0  ;;  %3375 = vmatmul.mubr.msk.f32.vlgmr.msra.gmra.mrb[10].mxu0 %vm553_vm2, %v976_v14  ;;  %v3171_v14 = vld [vmem:[%s4406_s8] ss:$0 sm:$0xff] }
 0x483   : > { %3383 = vmatpush3.msra.mxu0 %v1210_v13  ;;  %3384 = vmatprep.mubr.msk.f32.mxu0 %vm3765_vm0, %v3766_v1  ;;  %v3545_v13 = vpack.c.bf16 %v1642_v12, %v1641_v11 }
 0x484   : > { %3529 = vmatprep.subr.bf16.mxu0 %v3764_v0 }
 0x4e5   : > { %v1052_v17 = vpop.f32.mrb[4].mxu1 }
 0x4e6   : > { %v3361_v18 = vpop.f32.mrb[5].mxu1  ;;  %3380 = vmatmul.mubr.msk.f32.vlgmr.msra.gmra.mrb[8].mxu1 %vm553_vm2, %v1052_v17 }
 0x4e7   : > { %3388 = vmatpush3.msra.mxu1 %v1211_v16  ;;  %3389 = vmatprep.mubr.msk.f32.mxu1 %vm3765_vm0, %v3766_v1 }
 0x4e8   : > { %3535 = vmatprep.subr.bf16.mxu1 %v3764_v0 }
 0x4e9   : > { %v1204_v19 = vpop.f32.mrb[6].mxu1 }
 0x4ea   : > { %v1128_v20 = vpop.f32.mrb[8].mxu0  ;;  %v3371_v21 = vpop.f32.mrb[7].mxu1  ;;  %3390 = vmatmul.mubr.msk.f32.vlgmr.msra.gmra.mrb[10].mxu1 %vm553_vm2, %v1204_v19  ;;  %v3173_v19 = vld [vmem:[%s4408_s10] ss:$0 sm:$0xff] }
 0x4eb   : > { %v3366_v22 = vpop.f32.mrb[9].mxu0  ;;  %3385 = vmatmul.mubr.msk.f32.vlgmr.msra.gmra.mrb[12].mxu0 %vm553_vm2, %v1128_v20  ;;  %3419 = vmatprep.mubr.msk.f32.mxu1 %vm3765_vm0, %v3766_v1 }
 0x4ec   : > { %3400 = vmatprep.mubr.msk.f32.mxu0 %vm3765_vm0, %v3766_v1  ;;  %3531 = vmatpush3.bf16.msra.mxu0 %v3530_v46 }
 0x4ed   : > { %3532 = vmatprep.subr.bf16.mxu0 %v3764_v0  ;;  %3537 = vmatpush3.bf16.msra.mxu1 %v3536_v52 }
 0x4ee   : > { %3538 = vmatprep.subr.bf16.mxu1 %v3764_v0 }
 0x4f1   : > { %3540 = vmatpush3.bf16.msra.mxu1 %v3539_v54 }
 0x4f2   : > { %3541 = vmatprep.subr.bf16.mxu1 %v3764_v0 }
 0x4f5   : > { %3543 = vmatpush3.bf16.msra.mxu1 %v3542_v57 }
 0x4f6   : > { %3544 = vmatprep.subr.bf16.mxu1 %v3764_v0 }
 0x4f9   : > { %3546 = vmatpush3.bf16.msra.mxu1 %v3545_v13 }
 0x4fa   : > { %3438 = vmatprep.subr.mxu1 %v3766_v1 }
 0x555   : > { %v1281_v23 = vpop.f32.mrb[10].mxu0 }
 0x556   : > { %v3376_v24 = vpop.f32.mrb[11].mxu0  ;;  %v1504_v26 = vsel %vm470_vm1, %v1281_v23, 0.0 }
 0x5b9   : > { %v1354_v25 = vpop.f32.mrb[8].mxu1 }
 0x5ba   : > { %v1505_v27 = vsel %vm470_vm1, %v1354_v25, 0.0  ;;  %v3381_v28 = vpop.f32.mrb[9].mxu1 }
 0x5bb   : > { %v1506_v29 = vadd.f32 %v1505_v27, %v1504_v26  ;;  %v3181_v27 = vld [vmem:[%s4399_s1 + $0x20] sm:$0xff]  ;;  %v3182_v28 = vld [vmem:[%s4399_s1 + $0x28] sm:$0xff] }
 0x5bd   : > { %v1500_v30 = vpop.f32.mrb[10].mxu1 }
 0x5be   : > { %v1427_v31 = vpop.f32.mrb[12].mxu0  ;;  %v3391_v32 = vpop.f32.mrb[11].mxu1  ;;  %v1509_v37 = vsel %vm470_vm1, %v1500_v30, 0.0  ;;  %v3183_v30 = vld [vmem:[%s4399_s1 + $0x30] sm:$0xff] }
 0x5bf   : > { %v1507_v33 = vsel %vm470_vm1, %v1427_v31, 0.0  ;;  %v3386_v34 = vpop.f32.mrb[13].mxu0  ;;  %v3184_v31 = vld [vmem:[%s4399_s1 + $0x38] sm:$0xff] }
 0x5c0   : > { %v1508_v35 = vadd.f32 %v1507_v33, %v1506_v29  ;;  %v3548_v29 = vpack.c.bf16 %v3182_v28, %v3181_v27  ;;  %v3551_v32 = vpack.c.bf16 %v3184_v31, %v3183_v30 }
 0x5c2   : > { %v1510_v38 = vadd.f32 %v1509_v37, %v1508_v35 }
 0x5c4   : > { %v1517_v39 = vadd.f32 %v3168_v36, %v1510_v38 }
 0x5c6   : > { %v1518_v40 = vadd.f32 %v1517_v39, %v3975_v8  ;;  %v1553_v8 = vld [vmem:[%s4405_s7 + $0x10] sm:$0xff] }
 0x5c7   : > { %v3533_v48 = vpack.c.bf16 %v1554_v47, %v1553_v8  ;;  %v3185_v8 = vld [vmem:[%s4400_s2 + $0x1] ss:$0 sm:$0xff] }
 0x5c8   : > { %v1521_v41 = vsel %vm470_vm1, %v1518_v40, 0.0  ;;  %v1526_v42 = vmul.f32 %v1518_v40, %v1518_v40 }
 0x5c9   : > { %1522 = vadd.xlane.f32.xlu1 %v1521_v41  ;;  %3534 = vmatpush3.bf16.msra.mxu0 %v3533_v48 }
 0x5ca   : > { %v1527_v43 = vsel %vm470_vm1, %v1526_v42, 0.0  ;;  %3547 = vmatprep.subr.bf16.mxu0 %v3764_v0 }
 0x5cb   : > { %1528 = vadd.xlane.f32.xlu0 %v1527_v43 }
 0x656   : > { %v1523_v58 = vpop.xlane.xlu1 %1522 }
 0x657   : > { %v1525_v59 = vmul.f32 0.03125, %v1523_v58 }
 0x658   : > { %v1529_v60 = vpop.xlane.xlu0 %1528 }
 0x659   : > { %v1531_v61 = vmul.f32 %v1525_v59, %v1525_v59  ;;  %v1530_v62 = vmul.f32 0.03125, %v1529_v60  ;;  %v1535_v5 = vsub.f32 %v1518_v40, %v1525_v59  ;;  %v3175_v40 = vld [vmem:[%s4409_s11] ss:$0 sm:$0xff] }
 0x65b   : > { %v1532_v63 = vsub.f32 %v1530_v62, %v1531_v61 }
 0x65d   : > { %v1533_v2 = vadd.f32 1e-05, %v1532_v63 }
 0x65f   : > { %3641 = vrsqrt.f32 %v1533_v2 }
 0x669   : > { %v3642_v4 = vpop.eup %3641 }
 0x66a   : > { %v1542_v6 = vmul.f32 %v3642_v4, %v3169_v3 }
 0x66c   : > { %v1543_v9 = vmul.f32 %v1542_v6, %v1535_v5 }
 0x66e   : > { %v1550_v10 = vadd.f32 %v3170_v7, %v1543_v9 }
 0x670   : > { %3401 = vmatmul.mubr.msk.f32.vlgmr.msra.gmra.mrb[14].mxu0 %vm470_vm1, %v1550_v10 }
 0x671   : > { %3430 = vmatprep.mubr.msk.f32.mxu0 %vm3765_vm0, %v3766_v1  ;;  %3549 = vmatpush3.bf16.msra.mxu0 %v3548_v29 }
 0x672   : > { %3550 = vmatprep.subr.bf16.mxu0 %v3764_v0 }
 0x675   : > { %3552 = vmatpush3.bf16.msra.mxu0 %v3551_v32 }
 0x676   : > { %3433 = vmatprep.subr.mxu0 %v3766_v1 }
 0x743   : > { %v1630_v15 = vpop.f32.mrb[14].mxu0 }
 0x744   : > { %v1631_v16 = vadd.f32 %v3171_v14, %v1630_v15  ;;  %v3402_v17 = vpop.f32.mrb[15].mxu0 }
 0x746   : > { %v1634_v18 = vmax.f32 %v1631_v16, 0.0 }
 0x748   : > { %3420 = vmatmul.mubr.msk.f32.vlgmr.msra.gmra.mrb[12].mxu1 %vm1649_vm3, %v1634_v18 }
 0x749   : > { %3440 = vmatprep.mubr.msk.f32.mxu1 %vm3765_vm0, %v3766_v1 }
 0x81b   : > { %v1719_v20 = vpop.f32.mrb[12].mxu1 }
 0x81c   : > { %v1720_v21 = vadd.f32 %v3173_v19, %v1719_v20  ;;  %v3421_v22 = vpop.f32.mrb[13].mxu1 }
 0x81e   : > { %v1723_v23 = vadd.f32 %v1720_v21, %v1550_v10 }
 0x820   : > { %v1726_v24 = vsel %vm470_vm1, %v1723_v23, 0.0  ;;  %v1730_v25 = vmul.f32 %v1723_v23, %v1723_v23 }
 0x821   : > { %1727 = vadd.xlane.f32.xlu0 %v1726_v24 }
 0x822   : > { %v1731_v26 = vsel %vm470_vm1, %v1730_v25, 0.0 }
 0x823   : > { %1732 = vadd.xlane.f32.xlu1 %v1731_v26 }
 0x8ae   : > { %v1728_v33 = vpop.xlane.xlu0 %1727 }
 0x8af   : > { %v1729_v34 = vmul.f32 0.03125, %v1728_v33 }
 0x8b0   : > { %v1733_v35 = vpop.xlane.xlu1 %1732 }
 0x8b1   : > { %v1735_v36 = vmul.f32 %v1729_v34, %v1729_v34  ;;  %v1734_v37 = vmul.f32 0.03125, %v1733_v35  ;;  %v1739_v42 = vsub.f32 %v1723_v23, %v1729_v34 }
 0x8b3   : > { %v1736_v38 = vsub.f32 %v1734_v37, %v1735_v36 }
 0x8b5   : > { %v1737_v39 = vadd.f32 1e-05, %v1736_v38 }
 0x8b7   : > { %3643 = vrsqrt.f32 %v1737_v39 }
 0x8c1   : > { %v3644_v41 = vpop.eup %3643 }
 0x8c2   : > { %v1746_v43 = vmul.f32 %v3644_v41, %v3175_v40 }
 0x8c4   : > { %v1747_v45 = vmul.f32 %v1746_v43, %v1739_v42 }
 0x8c6   : > { %v4170_v46 = vadd.f32 %v3176_v44, %v1747_v45  ;;  %v3199_v45 = vld [vmem:[%s4401_s3 + $0x20] sm:$0xff] }
 0x8c8   : > { %3431 = vmatmul.mubr.msk.f32.vlgmr.msra.gmra.mrb[16].mxu0 %vm470_vm1, %v4170_v46 }
 0x8c9   : > { %3435 = vmatprep.mubr.msk.f32.mxu0 %vm3765_vm0, %v3766_v1 }
 0x99b   : > { %v1843_v47 = vpop.f32.mrb[16].mxu0 }
 0x99c   : > { %v1844_v48 = vadd.f32 %v3185_v8, %v1843_v47  ;;  %v3432_v49 = vpop.f32.mrb[17].mxu0 }
 0x99d   : > { %v3200_v49 = vld [vmem:[%s4401_s3 + $0x28] sm:$0xff] }
 0x99e   : > { %1850 = vrot.lane.b32.xlu1 %v1844_v48, %s3770_s17  ;;  %1848 = vrot.lane.b32.xlu0 %v1844_v48, %s4434_s19  ;;  %s4437_s17 = smov 64   ;;  %s4354_s19 = scalar_lea.hbm %s4411_s13, %s3232_s22 }
 0x9a2   : > { %1852 = vrot.lane.b32.xlu1 %v1844_v48, %s4435_s27  ;;  %1854 = vrot.lane.b32.xlu0 %v1844_v48, %s4436_s16  ;;  %s3065_s27 = scalar_lea.sflag [#allocation4], %s3948_s23 }
 0xa10   : > { %v4183_v50 = vpop.permute.xlu1 %1850  ;;  %v4185_v51 = vpop.permute.xlu0 %1848 }
 0xa11   : > { %2006 = vrot.lane.b32.xlu0 %v4183_v50, %s4436_s16  ;;  %1930 = vrot.lane.b32.xlu1 %v4185_v51, %s4436_s16 }
 0xa14   : > { %v4191_v52 = vpop.permute.xlu1 %1852  ;;  %v1855_v53 = vpop.permute.xlu0 %1854 }
 0xa15   : > { %2082 = vrot.lane.b32.xlu1 %v4191_v52, %s4436_s16  ;;  %3434 = vmatpush3.xpose.msk.msra.mxu0 %vm553_vm2, %v1855_v53  ;;  %v3202_v53 = vld [vmem:[%s4401_s3 + $0x38] sm:$0xff]  ;;  %s3695_s16 = scalar_lea.vmem %s4356_s18, 16 }
 0xa16   : > { %3443 = vmatprep.subr.mxu0 %v3766_v1  ;;  %p3696_p6 = scmp.ne.s32.totalorder %s4356_s18, %s3695_s16 }
 0xa18   : > { %3436 = vmatmul.mubr.msk.f32.vlgmr.msra.gmra.mrb[18].mxu0 %vm553_vm2, %v1844_v48  ;;  %p3697_p12 = pnand %p3696_p6, %p4438_p11 }
 0xa19   : > { %3445 = vmatprep.mubr.msk.f32.mxu0 %vm3765_vm0, %v3766_v1 }
 0xa1a   : > { %p3698_p13 = pneg %p3697_p12 }
 0xa83   : > { %v1931_v54 = vpop.permute.xlu1 %1930  ;;  %v2007_v55 = vpop.permute.xlu0 %2006 }
 0xa84   : > { %3439 = vmatpush3.xpose.msk.msra.mxu1 %vm553_vm2, %v1931_v54  ;;  %3444 = vmatpush3.xpose.msk.msra.mxu0 %vm553_vm2, %v2007_v55 }
 0xa85   : > { %3448 = vmatprep.subr.mxu1 %v3766_v1  ;;  %3453 = vmatprep.subr.mxu0 %v3766_v1 }
 0xa87   : > { %3441 = vmatmul.mubr.msk.f32.vlgmr.msra.gmra.mrb[14].mxu1 %vm553_vm2, %v4185_v51  ;;  %v2083_v56 = vpop.permute.xlu1 %2082  ;;  %3446 = vmatmul.mubr.msk.f32.vlgmr.msra.gmra.mrb[20].mxu0 %vm553_vm2, %v4183_v50 }
 0xa88   : > { %3449 = vmatpush3.xpose.msk.msra.mxu1 %vm553_vm2, %v2083_v56  ;;  %3450 = vmatprep.mubr.msk.f32.mxu1 %vm3765_vm0, %v3766_v1 }
 0xa89   : > { %3455 = vmatprep.mubr.msk.f32.mxu0 %vm3765_vm0, %v3766_v1  ;;  %3458 = vmatprep.subr.mxu1 %v3766_v1 }
 0xa8b   : > { %3451 = vmatmul.mubr.msk.f32.vlgmr.msra.gmra.mrb[16].mxu1 %vm553_vm2, %v4191_v52 }
 0xa8c   : > { %3460 = vmatprep.mubr.msk.f32.mxu1 %vm3765_vm0, %v3766_v1 }
 0xaeb   : > { %v1926_v57 = vpop.f32.mrb[18].mxu0 }
 0xaec   : > { %v2158_v58 = vmul.f32 0.35355338, %v1926_v57  ;;  %v3437_v59 = vpop.f32.mrb[19].mxu0 }
 0xaee   : > { %v2162_v60 = vsel %vm553_vm2, %v2158_v58, -inf }
 0xaef   : > { %2163 = vmax.xlane.f32.xlu0 %v2162_v60 }
 0xb5a   : > { %v2002_v61 = vpop.f32.mrb[14].mxu1  ;;  %v2078_v62 = vpop.f32.mrb[20].mxu0 }
 0xb5b   : > { %v2159_v63 = vmul.f32 0.35355338, %v2002_v61  ;;  %v2160_v2 = vmul.f32 0.35355338, %v2078_v62  ;;  %v3442_v3 = vpop.f32.mrb[15].mxu1  ;;  %v3447_v4 = vpop.f32.mrb[21].mxu0 }
 0xb5d   : > { %v2165_v5 = vsel %vm553_vm2, %v2159_v63, -inf  ;;  %v2168_v6 = vsel %vm553_vm2, %v2160_v2, -inf }
 0xb5e   : > { %2166 = vmax.xlane.f32.xlu1 %v2165_v5  ;;  %v2154_v7 = vpop.f32.mrb[16].mxu1  ;;  %2169 = vmax.xlane.f32.xlu0 %v2168_v6 }
 0xb5f   : > { %v2161_v9 = vmul.f32 0.35355338, %v2154_v7  ;;  %v3452_v10 = vpop.f32.mrb[17].mxu1 }
 0xb61   : > { %v2171_v11 = vsel %vm553_vm2, %v2161_v9, -inf }
 0xb62   : > { %2172 = vmax.xlane.f32.xlu0 %v2171_v11  ;;  %v3207_v11 = vld [vmem:[%s4402_s4 + $0x1] ss:$0 sm:$0xff] }
 0xb6f   : > { %2206 = vrot.lane.b32.xlu1 %v1844_v48, %s4437_s17 }
 0xb7c   : > { %v2164_v12 = vpop.xlane.xlu0 %2163 }
 0xb7d   : > { %v2174_v13 = vsub.f32 %v2158_v58, %v2164_v12 }
 0xb7f   : > { %v2178_v14 = vmul.f32 1.442695, %v2174_v13 }
 0xb81   : > { %3645 = vpow2.f32 %v2178_v14 }
 0xb8b   : > { %v3646_v15 = vpop.eup %3645 }
 0xb8c   : > { %v2186_v16 = vsel %vm553_vm2, %v3646_v15, 0.0 }
 0xb93   : > { %2187 = vadd.xlane.f32.xlu1 %v2186_v16 }
 0xbeb   : > { %v2167_v17 = vpop.xlane.xlu1 %2166  ;;  %v2170_v18 = vpop.xlane.xlu0 %2169 }
 0xbec   : > { %v2175_v19 = vsub.f32 %v2159_v63, %v2167_v17  ;;  %v2176_v20 = vsub.f32 %v2160_v2, %v2170_v18 }
 0xbee   : > { %v2180_v21 = vmul.f32 1.442695, %v2175_v19  ;;  %v2182_v22 = vmul.f32 1.442695, %v2176_v20  ;;  %v3212_v19 = vld [vmem:[%s4405_s7 + $0x20] sm:$0xff]  ;;  %v3213_v20 = vld [vmem:[%s4405_s7 + $0x28] sm:$0xff] }
 0xbef   : > { %v2207_v23 = vpop.permute.xlu1 %2206  ;;  %v2173_v24 = vpop.xlane.xlu0 %2172 }
 0xbf0   : > { %3647 = vpow2.f32 %v2180_v21  ;;  %v2177_v25 = vsub.f32 %v2161_v9, %v2173_v24  ;;  %3454 = vmatpush3.msra.mxu0 %v2207_v23  ;;  %v3554_v21 = vpack.c.bf16 %v3213_v20, %v3212_v19  ;;  %v3218_v24 = vld [vmem:[%s4407_s9 + $0x40] sm:$0xff] }
 0xbf1   : > { %3649 = vpow2.f32 %v2182_v22  ;;  %3463 = vmatprep.subr.mxu0 %v3766_v1  ;;  %v3215_v22 = vld [vmem:[%s4405_s7 + $0x38] sm:$0xff] }
 0xbf2   : > { %v2184_v26 = vmul.f32 1.442695, %v2177_v25  ;;  %v3219_v25 = vld [vmem:[%s4407_s9 + $0x48] sm:$0xff] }
 0xbf4   : > { %3651 = vpow2.f32 %v2184_v26  ;;  %v3220_v26 = vld [vmem:[%s4407_s9 + $0x50] sm:$0xff] }
 0xbfa   : > { %v3648_v27 = vpop.eup %3647 }
 0xbfb   : > { %v3650_v28 = vpop.eup %3649  ;;  %v2189_v29 = vsel %vm553_vm2, %v3648_v27, 0.0 }
 0xbfc   : > { %2190 = vadd.xlane.f32.xlu0 %v2189_v29  ;;  %v2192_v30 = vsel %vm553_vm2, %v3650_v28, 0.0 }
 0xbfd   : > { %2193 = vadd.xlane.f32.xlu1 %v2192_v30  ;;  %v3222_v30 = vld [vmem:[%s4407_s9 + $0x60] sm:$0xff] }
 0xbfe   : > { %v3652_v31 = vpop.eup %3651 }
 0xbff   : > { %v2195_v32 = vsel %vm553_vm2, %v3652_v31, 0.0 }
 0xc00   : > { %2196 = vadd.xlane.f32.xlu0 %v2195_v32 }
 0xc0e   : > { %2358 = vrot.lane.b32.xlu1 %v4183_v50, %s4437_s17  ;;  %v3201_v50 = vld [vmem:[%s4401_s3 + $0x30] sm:$0xff] }
 0xc12   : > { %2434 = vrot.lane.b32.xlu1 %v4191_v52, %s4437_s17 }
 0xc16   : > { %2282 = vrot.lane.b32.xlu0 %v4185_v51, %s4437_s17  ;;  %s3699_s17 = sshll.u32 %s3772_s29, 4  ;;  %s3700_s17 = int_to_ptr.vmem [resolvable:$false] %s3699_s17 }
 0xc17   : > { %s3701_s30 = scalar_lea.vmem %s3700_s17, 32  ;;  %p3702_p7 = scmp.lt.s32.totalorder %s4356_s18, %s3700_s17 }
 0xc18   : > { %p3703_p10 = scmp.lt.s32.totalorder %s3701_s30, %s3695_s16 }
 0xc1a   : > { %p3704_p2 = por %p3703_p10, %p3702_p7 }
 0xc1c   : > { %p3705_p4 = pnand %p3704_p2, %p3698_p13 }
 0xc20   : > { %v2188_v33 = vpop.xlane.xlu1 %2187 }
 0xc21   : > { %3653 = vrcp.f32 %v2188_v33 }
 0xc2b   : > { %v3654_v34 = vpop.eup %3653 }
 0xc2c   : > { %v2202_v35 = vmul.f32 %v3654_v34, %v3646_v15 }
 0xc2e   : > { %3456 = vmatmul.mubr.msk.f32.vlgmr.msra.gmra.mrb[22].mxu0 %vm553_vm2, %v2202_v35 }
 0xc2f   : > { %3465 = vmatprep.mubr.msk.f32.mxu0 %vm3765_vm0, %v3766_v1 }
 0xc89   : > { %v2191_v36 = vpop.xlane.xlu0 %2190 }
 0xc8a   : > { %v2194_v37 = vpop.xlane.xlu1 %2193  ;;  %3655 = vrcp.f32 %v2191_v36 }
 0xc8b   : > { %3657 = vrcp.f32 %v2194_v37 }
 0xc8d   : > { %v2197_v38 = vpop.xlane.xlu0 %2196 }
 0xc8e   : > { %v2359_v39 = vpop.permute.xlu1 %2358  ;;  %3659 = vrcp.f32 %v2197_v38 }
 0xc8f   : > { %3464 = vmatpush3.msra.mxu0 %v2359_v39 }
 0xc90   : > { %3473 = vmatprep.subr.mxu0 %v3766_v1 }
 0xc91   : > { %v2283_v40 = vpop.permute.xlu0 %2282 }
 0xc92   : > { %3459 = vmatpush3.msra.mxu1 %v2283_v40  ;;  %v2435_v8 = vpop.permute.xlu1 %2434  ;;  %v3210_v40 = vld [vmem:[%s4403_s5 + $0x1] ss:$0 sm:$0xff] }
 0xc93   : > { %3468 = vmatprep.subr.mxu1 %v3766_v1 }
 0xc94   : > { %v3656_v41 = vpop.eup %3655 }
 0xc95   : > { %v3658_v42 = vpop.eup %3657  ;;  %v2203_v43 = vmul.f32 %v3656_v41, %v3648_v27  ;;  %v3560_v27 = vpack.c.bf16 %v3219_v25, %v3218_v24 }
 0xc96   : > { %v2204_v44 = vmul.f32 %v3658_v42, %v3650_v28  ;;  %v3221_v28 = vld [vmem:[%s4407_s9 + $0x58] sm:$0xff] }
 0xc97   : > { %3461 = vmatmul.mubr.msk.f32.vlgmr.msra.gmra.mrb[18].mxu1 %vm553_vm2, %v2203_v43  ;;  %v3563_v29 = vpack.c.bf16 %v3221_v28, %v3220_v26 }
 0xc98   : > { %v3660_v47 = vpop.eup %3659  ;;  %3466 = vmatmul.mubr.msk.f32.vlgmr.msra.gmra.mrb[24].mxu0 %vm553_vm2, %v2204_v44  ;;  %3469 = vmatpush3.msra.mxu1 %v2435_v8  ;;  %v3211_v44 = vld [vmem:[%s4404_s6 + $0x1] ss:$0 sm:$0xff]  ;;  %v3224_v8 = vld [vmem:[%s4407_s9 + $0x70] sm:$0xff] }
 0xc99   : > { %v2205_v48 = vmul.f32 %v3660_v47, %v3652_v31  ;;  %3470 = vmatprep.mubr.msk.f32.mxu1 %vm3765_vm0, %v3766_v1  ;;  %3474 = vmatpush3.msra.mxu0 %v3199_v45  ;;  %v3223_v31 = vld [vmem:[%s4407_s9 + $0x68] sm:$0xff]  ;;  %v3225_v47 = vld [vmem:[%s4407_s9 + $0x78] sm:$0xff] }
 0xc9a   : > { %3475 = vmatprep.mubr.msk.f32.mxu0 %vm3765_vm0, %v3766_v1  ;;  %3478 = vmatprep.subr.mxu1 %v3766_v1  ;;  %v3566_v32 = vpack.c.bf16 %v3223_v31, %v3222_v30 }
 0xc9b   : > { %3471 = vmatmul.mubr.msk.f32.vlgmr.msra.gmra.mrb[20].mxu1 %vm553_vm2, %v2205_v48  ;;  %3483 = vmatprep.subr.mxu0 %v3766_v1  ;;  %v3569_v48 = vpack.c.bf16 %v3225_v47, %v3224_v8 }
 0xc9c   : > { %3479 = vmatpush3.msra.mxu1 %v3200_v49  ;;  %3480 = vmatprep.mubr.msk.f32.mxu1 %vm3765_vm0, %v3766_v1  ;;  %v3216_v49 = vld [vmem:[%s4406_s8 + $0x1] ss:$0 sm:$0xff] }
 0xc9d   : > { %3488 = vmatprep.subr.mxu1 %v3766_v1 }
 0xd01   : > { %v2278_v51 = vpop.f32.mrb[22].mxu0 }
 0xd02   : > { %v3457_v52 = vpop.f32.mrb[23].mxu0  ;;  %3476 = vmatmul.mubr.msk.f32.vlgmr.msra.gmra.mrb[26].mxu0 %vm553_vm2, %v2278_v51 }
 0xd03   : > { %3484 = vmatpush3.msra.mxu0 %v3201_v50  ;;  %3485 = vmatprep.mubr.msk.f32.mxu0 %vm3765_vm0, %v3766_v1 }
 0xd04   : > { %3553 = vmatprep.subr.bf16.mxu0 %v3764_v0 }
 0xd6a   : > { %v2354_v54 = vpop.f32.mrb[18].mxu1 }
 0xd6b   : > { %v2430_v55 = vpop.f32.mrb[24].mxu0  ;;  %v3462_v56 = vpop.f32.mrb[19].mxu1  ;;  %3481 = vmatmul.mubr.msk.f32.vlgmr.msra.gmra.mrb[22].mxu1 %vm553_vm2, %v2354_v54  ;;  %v3226_v54 = vld [vmem:[%s4408_s10 + $0x1] ss:$0 sm:$0xff] }
 0xd6c   : > { %v3467_v57 = vpop.f32.mrb[25].mxu0  ;;  %3486 = vmatmul.mubr.msk.f32.vlgmr.msra.gmra.mrb[28].mxu0 %vm553_vm2, %v2430_v55  ;;  %3489 = vmatpush3.msra.mxu1 %v3202_v53 }
 0xd6d   : > { %3490 = vmatprep.mubr.msk.f32.mxu1 %vm3765_vm0, %v3766_v1  ;;  %3501 = vmatprep.mubr.msk.f32.mxu0 %vm3765_vm0, %v3766_v1 }
 0xd6e   : > { %v2506_v58 = vpop.f32.mrb[20].mxu1  ;;  %3559 = vmatprep.subr.bf16.mxu1 %v3764_v0  ;;  %3555 = vmatpush3.bf16.msra.mxu0 %v3554_v21 }
 0xd6f   : > { %v3472_v59 = vpop.f32.mrb[21].mxu1  ;;  %3491 = vmatmul.mubr.msk.f32.vlgmr.msra.gmra.mrb[24].mxu1 %vm553_vm2, %v2506_v58  ;;  %3556 = vmatprep.subr.bf16.mxu0 %v3764_v0 }
 0xd70   : > { %3520 = vmatprep.mubr.msk.f32.mxu1 %vm3765_vm0, %v3766_v1  ;;  %3561 = vmatpush3.bf16.msra.mxu1 %v3560_v27 }
 0xd71   : > { %3562 = vmatprep.subr.bf16.mxu1 %v3764_v0 }
 0xd74   : > { %3564 = vmatpush3.bf16.msra.mxu1 %v3563_v29 }
 0xd75   : > { %3565 = vmatprep.subr.bf16.mxu1 %v3764_v0 }
 0xd78   : > { %3567 = vmatpush3.bf16.msra.mxu1 %v3566_v32 }
 0xd79   : > { %3568 = vmatprep.subr.bf16.mxu1 %v3764_v0 }
 0xd7c   : > { %3570 = vmatpush3.bf16.msra.mxu1 %v3569_v48 }
 0xdd5   : > { %v2584_v60 = vpop.f32.mrb[26].mxu0 }
 0xdd6   : > { %v3477_v61 = vpop.f32.mrb[27].mxu0  ;;  %v2807_v63 = vsel %vm470_vm1, %v2584_v60, 0.0 }
 0xe3e   : > { %v2657_v62 = vpop.f32.mrb[22].mxu1 }
 0xe3f   : > { %v2808_v2 = vsel %vm470_vm1, %v2657_v62, 0.0  ;;  %v2730_v3 = vpop.f32.mrb[28].mxu0  ;;  %v3482_v4 = vpop.f32.mrb[23].mxu1 }
 0xe40   : > { %v2809_v5 = vadd.f32 %v2808_v2, %v2807_v63  ;;  %v3487_v6 = vpop.f32.mrb[29].mxu0  ;;  %v2810_v7 = vsel %vm470_vm1, %v2730_v3, 0.0 }
 0xe42   : > { %v2811_v9 = vadd.f32 %v2810_v7, %v2809_v5  ;;  %v2803_v10 = vpop.f32.mrb[24].mxu1  ;;  %v3230_v7 = vld [vmem:[%s4409_s11 + $0x1] ss:$0 sm:$0xff] }
 0xe43   : > { %v2812_v1 = vsel %vm470_vm1, %v2803_v10, 0.0  ;;  %v3492_v12 = vpop.f32.mrb[25].mxu1 }
 0xe44   : > { %v2813_v13 = vadd.f32 %v2812_v1, %v2811_v9  ;;  %v3231_v1 = vld [vmem:[%s4410_s12 + $0x1] ss:$0 sm:$0xff] }
 0xe46   : > { %v2820_v14 = vadd.f32 %v3207_v11, %v2813_v13 }
 0xe48   : > { %v2821_v15 = vadd.f32 %v2820_v14, %v4170_v46  ;;  %v3214_v46 = vld [vmem:[%s4405_s7 + $0x30] sm:$0xff] }
 0xe49   : > { %v3557_v23 = vpack.c.bf16 %v3215_v22, %v3214_v46 }
 0xe4a   : > { %v2826_v16 = vsel %vm470_vm1, %v2821_v15, 0.0  ;;  %v2830_v17 = vmul.f32 %v2821_v15, %v2821_v15 }
 0xe4b   : > { %2827 = vadd.xlane.f32.xlu0 %v2826_v16  ;;  %3558 = vmatpush3.bf16.msra.mxu0 %v3557_v23 }
 0xe4c   : > { %v2831_v18 = vsel %vm470_vm1, %v2830_v17, 0.0 }
 0xe4d   : > { %2832 = vadd.xlane.f32.xlu1 %v2831_v18 }
 0xed8   : > { %v2828_v33 = vpop.xlane.xlu0 %2827 }
 0xed9   : > { %v2829_v34 = vmul.f32 0.03125, %v2828_v33 }
 0xeda   : > { %v2833_v35 = vpop.xlane.xlu1 %2832 }
 0xedb   : > { %v2835_v36 = vmul.f32 %v2829_v34, %v2829_v34  ;;  %v2834_v37 = vmul.f32 0.03125, %v2833_v35  ;;  %v2839_v42 = vsub.f32 %v2821_v15, %v2829_v34 }
 0xedd   : > { %v2836_v38 = vsub.f32 %v2834_v37, %v2835_v36 }
 0xedf   : > { %v2837_v39 = vadd.f32 1e-05, %v2836_v38 }
 0xee1   : > { %3661 = vrsqrt.f32 %v2837_v39 }
 0xeeb   : > { %v3662_v41 = vpop.eup %3661 }
 0xeec   : > { %v2846_v43 = vmul.f32 %v3662_v41, %v3210_v40 }
 0xeee   : > { %v2847_v0 = vmul.f32 %v2846_v43, %v2839_v42 }
 0xef0   : > { %v2854_v45 = vadd.f32 %v3211_v44, %v2847_v0 }
 0xef2   : > { %3502 = vmatmul.mubr.msk.f32.vlgmr.msra.gmra.mrb[30].mxu0 %vm470_vm1, %v2854_v45 }
 0xfc5   : > { %v2935_v50 = vpop.f32.mrb[30].mxu0 }
 0xfc6   : > { %v2936_v51 = vadd.f32 %v3216_v49, %v2935_v50  ;;  %v3503_v52 = vpop.f32.mrb[31].mxu0 }
 0xfc8   : > { %v2939_v53 = vmax.f32 %v2936_v51, 0.0 }
 0xfca   : > { %3521 = vmatmul.mubr.msk.f32.vlgmr.msra.gmra.mrb[26].mxu1 %vm1649_vm3, %v2939_v53 }
0x109d   : > { %v3024_v55 = vpop.f32.mrb[26].mxu1 }
0x109e   : > { %v3025_v56 = vadd.f32 %v3226_v54, %v3024_v55  ;;  %v3522_v57 = vpop.f32.mrb[27].mxu1 }
0x10a0   : > { %v3028_v58 = vadd.f32 %v3025_v56, %v2854_v45 }
0x10a2   : > { %v3033_v59 = vsel %vm470_vm1, %v3028_v58, 0.0  ;;  %v3037_v60 = vmul.f32 %v3028_v58, %v3028_v58 }
0x10a3   : > { %3034 = vadd.xlane.f32.xlu0 %v3033_v59 }
0x10a4   : > { %v3038_v61 = vsel %vm470_vm1, %v3037_v60, 0.0 }
0x10a7   : > { %3039 = vadd.xlane.f32.xlu0 %v3038_v61 }
0x1130   : > { %v3035_v62 = vpop.xlane.xlu0 %3034 }
0x1131   : > { %v3036_v63 = vmul.f32 0.03125, %v3035_v62 }
0x1133   : > { %v3042_v3 = vmul.f32 %v3036_v63, %v3036_v63  ;;  %v3046_v10 = vsub.f32 %v3028_v58, %v3036_v63 }
0x1134   : > { %v3040_v2 = vpop.xlane.xlu0 %3039 }
0x1135   : > { %v3041_v4 = vmul.f32 0.03125, %v3040_v2 }
0x1137   : > { %v3043_v5 = vsub.f32 %v3041_v4, %v3042_v3 }
0x1139   : > { %v3044_v6 = vadd.f32 1e-05, %v3043_v5 }
0x113b   : > { %3663 = vrsqrt.f32 %v3044_v6 }
0x1145   : > { %v3664_v9 = vpop.eup %3663 }
0x1146   : > { %v3053_v11 = vmul.f32 %v3664_v9, %v3230_v7 }
0x1148   : > { %v3054_v12 = vmul.f32 %v3053_v11, %v3046_v10 }
0x114a   : > { %v3061_v13 = vadd.f32 %v3231_v1, %v3054_v12 }
0x114c   : > { %3063 = vst.msk [vmem:[%s454_s15 - $0x7] sm:$0x80] %vm3062_vm4, %v3061_v13 }
0x114d   : > { %3708 = shalt.err (!%p3705_p4)
}
0x114e   : > { %s3709_s23 = scalar_lea.hbm %s4354_s19, 16  ;;  %s3713_s15 = scalar_lea.hbm %s4411_s13, 32 }
0x114f   : > { %p3710_p5 = scmp.ne.s32.totalorder %s4354_s19, %s3709_s23  ;;  %p3714_p0 = scmp.lt.u32.totalorder %s4354_s19, %s4411_s13 }
0x1150   : > { %p3715_p1 = scmp.lt.u32.totalorder %s3713_s15, %s3709_s23  ;;  %p3717_p6 = scmp.lt.u32.totalorder %s3709_s23, %s4354_s19 }
0x1151   : > { %p3711_p8 = pnand %p3710_p5, %p4438_p11 }
0x1152   : > { %p3716_p3 = por %p3715_p1, %p3714_p0 }
0x1153   : > { %p3712_p9 = pneg %p3711_p8 }
0x1154   : > { %p3718_p12 = por %p3717_p6, %p3716_p3 }
0x1156   : > { %p3719_p13 = pnand %p3718_p12, %p3712_p9 }
0x1158   : > { %3722 = shalt.err (!%p3719_p13)
}
0x1159   : > { %3573 = dma.vmem_to_hbm [thread:$0]  (%p4438_p11), %s4356_s18, 16, %s4354_s19, %s3065_s27  }
0x115a PF: > { %s4439_s16 = sld [smem:[#allocation8_spill]]  ;;  %p4440_p7 = scmp.ne.s32.totalorder %s4430_s21, 0 }
0x115b   : > { %p4441_p10 = scmp.ge.s32.totalorder %s3761_s28, 2 }
0x115d   : > { %p3580_p2 = pnand %p4441_p10, %p4440_p7 }
0x1160   : > { %s3089_s29 = sand.u32 1, %s4439_s16  }
0x1161   : > { %s3090_s17 = scalar_lea.sflag [#allocation4], %s3089_s29 }
0x1162   : > { %3744 = dma.done.wait (!%p3580_p2), %s3090_s17, 16  }
0x1163   : > { %3746 = vsyncadd (!%p3580_p2), %s3090_s17, 4294967280  ;;  %s4442_s28 = sld [smem:[#allocation10_spill]]  ;;  %s4443_s30 = sld [smem:[#allocation9_spill]] }
0x1164   : > { %s4444_s27 = sld [smem:[#allocation11_spill]]  ;;  %s4445_s25 = smov %s3753_s26 }
0x1169   : > { %p26_p4 = scmp.ge.s32.totalorder %s4442_s28, 4   ;;  %s4446_s26 = smov %s4443_s30 }
0x116b   :  { %28 = sbr.rel (!%p26_p4) target bundleno = 5 (0x5), region = 129 }
0x1172   :  { %3094 = vsyncpa [#allocation3], 1 }
0x1173   :  { %3096 = vsyncpa [#allocation3 + $0x1], 1 }
0x1174   :  { %3097 = vsyncpa [#allocation4], 1 }
0x1175   :  { %3099 = vsyncpa [#allocation4 + $0x1], 1 }

</bundles_post_ra>
